<compile_context>
chip_gen: v5e
topology: v5e:2x2
jax: 0.10.0
libtpu: 0.0.40
codegen_flags: <defaults>
</compile_context>

<pallas_src>
import functools

import jax
import jax.numpy as jnp
from jax.experimental import pallas as pl
from jax.experimental.pallas import tpu as pltpu


_LANE = 128     # f32 lane width
_SUBLANE = 8    # f32 sublane count

# Fold GAP+projection into one MXU matmul only while the expanded weight
# W_big[(C*H*W), backbone_dim] stays small enough to sit resident in VMEM.
_FOLD_WEIGHT_BYTES = 8 << 20
# VMEM byte budget for the double-buffered activation blocks.
_X_BLOCK_BUDGET = 24 << 20


def _round_up(x, m):
    return ((x + m - 1) // m) * m


# ----------------------------- kernels ------------------------------------- #

def _head_chain(feats, w1, b1, w2, b2, w3, b3, out_refs):
    # concept_head: Linear(512,128) -> ReLU -> Dropout (identity) -> Linear(128, nC)
    h = jnp.maximum(
        jnp.dot(feats, w1, preferred_element_type=jnp.float32) + b1, 0.0)
    concept_logits = jnp.dot(h, w2, preferred_element_type=jnp.float32) + b2
    # bottleneck_activation == 'sigmoid'
    concepts = jax.nn.sigmoid(concept_logits)
    # classifier on zero-padded weights: padded concept lanes are sigmoid(0)=0.5
    # but multiply all-zero rows of w3, so they contribute nothing.
    class_logits = jnp.dot(concepts, w3, preferred_element_type=jnp.float32) + b3
    out_refs[0][...] = class_logits
    if len(out_refs) == 3:
        out_refs[1][...] = concepts
        out_refs[2][...] = concept_logits


def _cbm_kernel_folded(x_ref, wbig_ref, bp_ref, w1_ref, b1_ref, w2_ref, b2_ref,
                       w3_ref, b3_ref, *out_refs):
    # x_ref: (TB, C*H*W) dense 2-D block.  GAP + projection folded into one
    # MXU matmul against W_big = repeat(w_proj / HW, HW, axis=0).
    feats = (jnp.dot(x_ref[...], wbig_ref[...],
                     preferred_element_type=jnp.float32) + bp_ref[...])
    _head_chain(feats, w1_ref[...], b1_ref[...], w2_ref[...], b2_ref[...],
                w3_ref[...], b3_ref[...], out_refs)


def _cbm_kernel_gap(x_ref, wp_ref, bp_ref, w1_ref, b1_ref, w2_ref, b2_ref,
                    w3_ref, b3_ref, *out_refs):
    # Fallback for large spatial inputs: lane-dense GAP over (TB, C, H*W),
    # then the small C -> backbone_dim projection.
    hw = x_ref.shape[-1]
    pooled = jnp.sum(x_ref[...], axis=-1) * (1.0 / float(hw))          # (TB, C)
    feats = (jnp.dot(pooled, wp_ref[...],
                     preferred_element_type=jnp.float32) + bp_ref[...])
    _head_chain(feats, w1_ref[...], b1_ref[...], w2_ref[...], b2_ref[...],
                w3_ref[...], b3_ref[...], out_refs)


# ----------------------------- wrapper -------------------------------------- #

def _full_spec(a):
    # Whole-array block, same block every grid step (stays resident).
    return pl.BlockSpec(a.shape, lambda i, _nd=a.ndim: (0,) * _nd)


@functools.partial(jax.jit, static_argnames=("return_concepts",))
def concept_bottleneck_forward(x, params, return_concepts=False):
    B, C, H, W = x.shape
    w_proj, b_proj = params["w_proj"], params["b_proj"]
    w1, b1 = params["w1"], params["b1"]
    w2, b2 = params["w2"], params["b2"]
    w3, b3 = params["w3"], params["b3"]

    backbone_dim = w_proj.shape[1]
    num_concepts = w2.shape[1]
    num_classes = w3.shape[1]
    nco_pad = _round_up(num_concepts, _LANE)   # 10 -> 128
    ncl_pad = _round_up(num_classes, _LANE)    # 10 -> 128

    hw = H * W
    K = C * hw

    # Zero-pad the narrow heads to full 128-lane width (unmasked stores).
    w2p = jnp.pad(w2, ((0, 0), (0, nco_pad - num_concepts)))
    b2p = jnp.pad(b2, ((0, 0), (0, nco_pad - num_concepts)))
    w3p = jnp.pad(w3, ((0, nco_pad - num_concepts), (0, ncl_pad - num_classes)))
    b3p = jnp.pad(b3, ((0, 0), (0, ncl_pad - num_classes)))

    fold = (K * backbone_dim * 4) <= _FOLD_WEIGHT_BYTES
    if fold:
        # Dense 2-D activation block + folded pooling weight (ideally W_big is
        # precomputed once by the caller; it is tiny vs the batch activations).
        x_in = x.reshape(B, K)
        w_in = jnp.repeat(w_proj * (1.0 / float(hw)), hw, axis=0)   # (K, 512)
        kernel = _cbm_kernel_folded
        row_bytes = _round_up(K, _LANE) * 4
    else:
        x_in = x.reshape(B, C, hw)
        w_in = w_proj
        kernel = _cbm_kernel_gap
        row_bytes = _round_up(C, _SUBLANE) * _round_up(hw, _LANE) * 4

    # Batch tile: exact whole-batch block for small B (no padding, no masking);
    # otherwise a VMEM-budget-capped tile with >= 2 blocks so v7x's two
    # TensorCores both get work.  No jnp.pad of x: the trailing partial block's
    # out-of-bounds rows are simply dropped on store.
    if B < 16:
        tb = B
    else:
        budget_rows = max(_SUBLANE, _X_BLOCK_BUDGET // (2 * row_bytes))
        budget_rows = max(_SUBLANE, (budget_rows // _SUBLANE) * _SUBLANE)
        tb = min(512, budget_rows, _round_up(pl.cdiv(B, 2), _SUBLANE))
    grid = (pl.cdiv(B, tb),)

    if fold:
        x_spec = pl.BlockSpec((tb, K), lambda i: (i, 0))
    else:
        x_spec = pl.BlockSpec((tb, C, hw), lambda i: (i, 0, 0))

    n_out = 3 if return_concepts else 1
    out_shapes = [jax.ShapeDtypeStruct((B, ncl_pad), jnp.float32)]
    out_specs = [pl.BlockSpec((tb, ncl_pad), lambda i: (i, 0))]
    if return_concepts:
        out_shapes += [jax.ShapeDtypeStruct((B, nco_pad), jnp.float32)] * 2
        out_specs += [pl.BlockSpec((tb, nco_pad), lambda i: (i, 0))] * 2

    # VMEM estimate: double-buffered x blocks + resident weights + out blocks.
    weight_bytes = sum(int(a.size) * 4
                       for a in (w_in, b_proj, w1, b1, w2p, b2p, w3p, b3p))
    vmem_est = (2 * tb * row_bytes + 2 * weight_bytes
                + 2 * n_out * _round_up(tb, _SUBLANE) * _LANE * 4 + (2 << 20))
    vmem_limit = int(min(max(vmem_est, 32 << 20), 48 << 20))

    results = pl.pallas_call(
        kernel,
        out_shape=tuple(out_shapes),
        grid=grid,
        in_specs=[
            x_spec,
            _full_spec(w_in), _full_spec(b_proj),
            _full_spec(w1), _full_spec(b1),
            _full_spec(w2p), _full_spec(b2p),
            _full_spec(w3p), _full_spec(b3p),
        ],
        out_specs=tuple(out_specs),
        compiler_params=pltpu.CompilerParams(
            dimension_semantics=("parallel",),
            vmem_limit_bytes=vmem_limit),
    )(x_in, w_in, b_proj, w1, b1, w2p, b2p, w3p, b3p)

    class_logits = results[0][:, :num_classes]
    if return_concepts:
        concepts = results[1][:, :num_concepts]
        concept_logits = results[2][:, :num_concepts]
        return class_logits, concepts, concept_logits
    return class_logits


# ----------------------------- reference (pure JAX) ------------------------ #

def reference_forward(x, params):
    pooled = jnp.mean(x, axis=(2, 3))
    feats = pooled @ params["w_proj"] + params["b_proj"]
    h = jnp.maximum(feats @ params["w1"] + params["b1"], 0.0)
    concept_logits = h @ params["w2"] + params["b2"]
    concepts = jax.nn.sigmoid(concept_logits)
    class_logits = concepts @ params["w3"] + params["b3"]
    return class_logits, concepts, concept_logits


# ----------------------------- main ---------------------------------------- #

def _make_params(key, C, backbone_dim=512, concept_dim=128,
                 num_concepts=10, num_classes=10):
    kp, k1, k2, k3 = jax.random.split(key, 4)
    return {
        # backbone stub (GAP + projection)
        "w_proj": jax.random.normal(kp, (C, backbone_dim), jnp.float32) * 0.05,
        "b_proj": jnp.zeros((1, backbone_dim), jnp.float32),
        # concept_head: Linear(512,128) -> ReLU -> Dropout -> Linear(128,10)
        "w1": jax.random.normal(k1, (backbone_dim, concept_dim), jnp.float32) * 0.02,
        "b1": jnp.zeros((1, concept_dim), jnp.float32),
        "w2": jax.random.normal(k2, (concept_dim, num_concepts), jnp.float32) * 0.05,
        "b2": jnp.zeros((1, num_concepts), jnp.float32),
        # classifier: Linear(10,10)
        "w3": jax.random.normal(k3, (num_concepts, num_classes), jnp.float32) * 0.1,
        "b3": jnp.zeros((1, num_classes), jnp.float32),
    }


def _check(x, params):
    out = concept_bottleneck_forward(x, params, return_concepts=True)
    class_logits, concepts, concept_logits = jax.block_until_ready(out)
    ref_logits, ref_concepts, ref_clogits = reference_forward(x, params)

    B = x.shape[0]
    assert class_logits.shape == (B, params["w3"].shape[1])
    assert concepts.shape == (B, params["w2"].shape[1])
    assert concept_logits.shape == (B, params["w2"].shape[1])
    assert jnp.allclose(class_logits, ref_logits, atol=1e-4, rtol=1e-4)
    assert jnp.allclose(concepts, ref_concepts, atol=1e-4, rtol=1e-4)
    assert jnp.allclose(concept_logits, ref_clogits, atol=1e-4, rtol=1e-4)

    # Single-output variant (return_concepts=False): no concept HBM writeback.
    logits_only = jax.block_until_ready(
        concept_bottleneck_forward(x, params, return_concepts=False))
    assert jnp.allclose(logits_only, ref_logits, atol=1e-4, rtol=1e-4)


if __name__ == "__main__":
    key = jax.random.PRNGKey(0)
    kx1, kp1, kx2, kp2 = jax.random.split(key, 4)

    # Small-shape case: folded GAP+projection path (W_big fits VMEM).
    B, C, H, W = 2, 4, 16, 16
    x = jax.random.normal(kx1, (B, C, H, W), dtype=jnp.float32)
    params = _make_params(kp1, C)
    _check(x, params)

    # Larger spatial input: exercises the lane-dense GAP fallback path.
    B2, C2, H2, W2 = 2, 3, 64, 64
    x2 = jax.random.normal(kx2, (B2, C2, H2, W2), dtype=jnp.float32)
    params2 = _make_params(kp2, C2)
    _check(x2, params2)

    print("KERNEL_OK")
</pallas_src>

<mosaic_0001>
module attributes {stable_mosaic.version = 11 : i64} {
  func.func @_cbm_kernel_folded(%arg0: i32, %arg1: memref<2x1024xf32, #tpu.memory_space<vmem>>, %arg2: memref<1024x512xf32, #tpu.memory_space<vmem>>, %arg3: memref<1x512xf32, #tpu.memory_space<vmem>>, %arg4: memref<512x128xf32, #tpu.memory_space<vmem>>, %arg5: memref<1x128xf32, #tpu.memory_space<vmem>>, %arg6: memref<128x128xf32, #tpu.memory_space<vmem>>, %arg7: memref<1x128xf32, #tpu.memory_space<vmem>>, %arg8: memref<128x128xf32, #tpu.memory_space<vmem>>, %arg9: memref<1x128xf32, #tpu.memory_space<vmem>>, %arg10: memref<2x128xf32, #tpu.memory_space<vmem>>, %arg11: memref<2x128xf32, #tpu.memory_space<vmem>>, %arg12: memref<2x128xf32, #tpu.memory_space<vmem>>) attributes {dimension_semantics = [#tpu.dimension_semantics<parallel>], iteration_bounds = array<i64: 1>, scalar_prefetch = 0 : i64, scratch_operands = 0 : i64, tpu.core_type = #tpu.core_type<tc>, window_params = [{transform_indices = @transform_0, window_bounds = array<i64: 2, 1024>}, {pipeline_mode = #tpu.pipeline_mode<synchronous>, transform_indices = @transform_1, window_bounds = array<i64: 1024, 512>}, {pipeline_mode = #tpu.pipeline_mode<synchronous>, transform_indices = @transform_2, window_bounds = array<i64: 1, 512>}, {pipeline_mode = #tpu.pipeline_mode<synchronous>, transform_indices = @transform_3, window_bounds = array<i64: 512, 128>}, {pipeline_mode = #tpu.pipeline_mode<synchronous>, transform_indices = @transform_4, window_bounds = array<i64: 1, 128>}, {pipeline_mode = #tpu.pipeline_mode<synchronous>, transform_indices = @transform_5, window_bounds = array<i64: 128, 128>}, {pipeline_mode = #tpu.pipeline_mode<synchronous>, transform_indices = @transform_6, window_bounds = array<i64: 1, 128>}, {pipeline_mode = #tpu.pipeline_mode<synchronous>, transform_indices = @transform_7, window_bounds = array<i64: 128, 128>}, {pipeline_mode = #tpu.pipeline_mode<synchronous>, transform_indices = @transform_8, window_bounds = array<i64: 1, 128>}, {transform_indices = @transform_9, window_bounds = array<i64: 2, 128>}, {transform_indices = @transform_10, window_bounds = array<i64: 2, 128>}, {transform_indices = @transform_11, window_bounds = array<i64: 2, 128>}]} {
    %c0 = arith.constant 0 : index
    %c0_0 = arith.constant 0 : index
    %0 = vector.load %arg1[%c0, %c0_0] : memref<2x1024xf32, #tpu.memory_space<vmem>>, vector<2x1024xf32>
    %c0_1 = arith.constant 0 : index
    %c0_2 = arith.constant 0 : index
    %1 = vector.load %arg2[%c0_1, %c0_2] : memref<1024x512xf32, #tpu.memory_space<vmem>>, vector<1024x512xf32>
    %cst = arith.constant dense<0.000000e+00> : vector<2x512xf32>
    %2 = tpu.matmul %0, %1, %cst {dimension_numbers = #tpu.dot_dimension_numbers<[1], [0], [0], [1], [0, 0, 1, 1], [], []>} : vector<2x1024xf32>, vector<1024x512xf32>, vector<2x512xf32> -> vector<2x512xf32>
    %c0_3 = arith.constant 0 : index
    %c0_4 = arith.constant 0 : index
    %3 = vector.load %arg3[%c0_3, %c0_4] : memref<1x512xf32, #tpu.memory_space<vmem>>, vector<1x512xf32>
    %4 = vector.broadcast %3 : vector<1x512xf32> to vector<2x512xf32>
    %5 = arith.addf %2, %4 : vector<2x512xf32>
    %c0_5 = arith.constant 0 : index
    %c0_6 = arith.constant 0 : index
    %6 = vector.load %arg4[%c0_5, %c0_6] : memref<512x128xf32, #tpu.memory_space<vmem>>, vector<512x128xf32>
    %c0_7 = arith.constant 0 : index
    %c0_8 = arith.constant 0 : index
    %7 = vector.load %arg5[%c0_7, %c0_8] : memref<1x128xf32, #tpu.memory_space<vmem>>, vector<1x128xf32>
    %c0_9 = arith.constant 0 : index
    %c0_10 = arith.constant 0 : index
    %8 = vector.load %arg6[%c0_9, %c0_10] : memref<128x128xf32, #tpu.memory_space<vmem>>, vector<128x128xf32>
    %c0_11 = arith.constant 0 : index
    %c0_12 = arith.constant 0 : index
    %9 = vector.load %arg7[%c0_11, %c0_12] : memref<1x128xf32, #tpu.memory_space<vmem>>, vector<1x128xf32>
    %c0_13 = arith.constant 0 : index
    %c0_14 = arith.constant 0 : index
    %10 = vector.load %arg8[%c0_13, %c0_14] : memref<128x128xf32, #tpu.memory_space<vmem>>, vector<128x128xf32>
    %c0_15 = arith.constant 0 : index
    %c0_16 = arith.constant 0 : index
    %11 = vector.load %arg9[%c0_15, %c0_16] : memref<1x128xf32, #tpu.memory_space<vmem>>, vector<1x128xf32>
    %cst_17 = arith.constant dense<0.000000e+00> : vector<2x128xf32>
    %12 = tpu.matmul %5, %6, %cst_17 {dimension_numbers = #tpu.dot_dimension_numbers<[1], [0], [0], [1], [0, 0, 1, 1], [], []>} : vector<2x512xf32>, vector<512x128xf32>, vector<2x128xf32> -> vector<2x128xf32>
    %13 = vector.broadcast %7 : vector<1x128xf32> to vector<2x128xf32>
    %14 = arith.addf %12, %13 : vector<2x128xf32>
    %cst_18 = arith.constant 0.000000e+00 : f32
    %15 = vector.broadcast %cst_18 : f32 to vector<2x128xf32>
    %16 = arith.maximumf %14, %15 : vector<2x128xf32>
    %cst_19 = arith.constant dense<0.000000e+00> : vector<2x128xf32>
    %17 = tpu.matmul %16, %8, %cst_19 {dimension_numbers = #tpu.dot_dimension_numbers<[1], [0], [0], [1], [0, 0, 1, 1], [], []>} : vector<2x128xf32>, vector<128x128xf32>, vector<2x128xf32> -> vector<2x128xf32>
    %18 = vector.broadcast %9 : vector<1x128xf32> to vector<2x128xf32>
    %19 = arith.addf %17, %18 : vector<2x128xf32>
    %20 = arith.negf %19 : vector<2x128xf32>
    %21 = math.exp %20 : vector<2x128xf32>
    %cst_20 = arith.constant 1.000000e+00 : f32
    %22 = vector.broadcast %cst_20 : f32 to vector<2x128xf32>
    %23 = arith.addf %22, %21 : vector<2x128xf32>
    %24 = arith.divf %22, %23 : vector<2x128xf32>
    %cst_21 = arith.constant dense<0.000000e+00> : vector<2x128xf32>
    %25 = tpu.matmul %24, %10, %cst_21 {dimension_numbers = #tpu.dot_dimension_numbers<[1], [0], [0], [1], [0, 0, 1, 1], [], []>} : vector<2x128xf32>, vector<128x128xf32>, vector<2x128xf32> -> vector<2x128xf32>
    %26 = vector.broadcast %11 : vector<1x128xf32> to vector<2x128xf32>
    %27 = arith.addf %25, %26 : vector<2x128xf32>
    %c0_22 = arith.constant 0 : index
    %c0_23 = arith.constant 0 : index
    %28 = vector.load %arg10[%c0_22, %c0_23] : memref<2x128xf32, #tpu.memory_space<vmem>>, vector<2x128xf32>
    tpu.vector_store %arg10[%c0_22, %c0_23], %27 {strides = array<i32>} : memref<2x128xf32, #tpu.memory_space<vmem>>, vector<2x128xf32>,
    %c0_24 = arith.constant 0 : index
    %c0_25 = arith.constant 0 : index
    %29 = vector.load %arg11[%c0_24, %c0_25] : memref<2x128xf32, #tpu.memory_space<vmem>>, vector<2x128xf32>
    tpu.vector_store %arg11[%c0_24, %c0_25], %24 {strides = array<i32>} : memref<2x128xf32, #tpu.memory_space<vmem>>, vector<2x128xf32>,
    %c0_26 = arith.constant 0 : index
    %c0_27 = arith.constant 0 : index
    %30 = vector.load %arg12[%c0_26, %c0_27] : memref<2x128xf32, #tpu.memory_space<vmem>>, vector<2x128xf32>
    tpu.vector_store %arg12[%c0_26, %c0_27], %19 {strides = array<i32>} : memref<2x128xf32, #tpu.memory_space<vmem>>, vector<2x128xf32>,
    return
  }
  func.func @transform_0(%arg0: i32) -> (i32, i32) {
    %c0_i32 = arith.constant 0 : i32
    %c0_i32_0 = arith.constant 0 : i32
    return %arg0, %c0_i32 : i32, i32
  }
  func.func @transform_1(%arg0: i32) -> (i32, i32) {
    %c0_i32 = arith.constant 0 : i32
    %c0_i32_0 = arith.constant 0 : i32
    %c0_i32_1 = arith.constant 0 : i32
    return %c0_i32, %c0_i32_0 : i32, i32
  }
  func.func @transform_2(%arg0: i32) -> (i32, i32) {
    %c0_i32 = arith.constant 0 : i32
    %c0_i32_0 = arith.constant 0 : i32
    %c0_i32_1 = arith.constant 0 : i32
    return %c0_i32, %c0_i32_0 : i32, i32
  }
  func.func @transform_3(%arg0: i32) -> (i32, i32) {
    %c0_i32 = arith.constant 0 : i32
    %c0_i32_0 = arith.constant 0 : i32
    %c0_i32_1 = arith.constant 0 : i32
    return %c0_i32, %c0_i32_0 : i32, i32
  }
  func.func @transform_4(%arg0: i32) -> (i32, i32) {
    %c0_i32 = arith.constant 0 : i32
    %c0_i32_0 = arith.constant 0 : i32
    %c0_i32_1 = arith.constant 0 : i32
    return %c0_i32, %c0_i32_0 : i32, i32
  }
  func.func @transform_5(%arg0: i32) -> (i32, i32) {
    %c0_i32 = arith.constant 0 : i32
    %c0_i32_0 = arith.constant 0 : i32
    %c0_i32_1 = arith.constant 0 : i32
    return %c0_i32, %c0_i32_0 : i32, i32
  }
  func.func @transform_6(%arg0: i32) -> (i32, i32) {
    %c0_i32 = arith.constant 0 : i32
    %c0_i32_0 = arith.constant 0 : i32
    %c0_i32_1 = arith.constant 0 : i32
    return %c0_i32, %c0_i32_0 : i32, i32
  }
  func.func @transform_7(%arg0: i32) -> (i32, i32) {
    %c0_i32 = arith.constant 0 : i32
    %c0_i32_0 = arith.constant 0 : i32
    %c0_i32_1 = arith.constant 0 : i32
    return %c0_i32, %c0_i32_0 : i32, i32
  }
  func.func @transform_8(%arg0: i32) -> (i32, i32) {
    %c0_i32 = arith.constant 0 : i32
    %c0_i32_0 = arith.constant 0 : i32
    %c0_i32_1 = arith.constant 0 : i32
    return %c0_i32, %c0_i32_0 : i32, i32
  }
  func.func @transform_9(%arg0: i32) -> (i32, i32) {
    %c0_i32 = arith.constant 0 : i32
    %c0_i32_0 = arith.constant 0 : i32
    return %arg0, %c0_i32 : i32, i32
  }
  func.func @transform_10(%arg0: i32) -> (i32, i32) {
    %c0_i32 = arith.constant 0 : i32
    %c0_i32_0 = arith.constant 0 : i32
    return %arg0, %c0_i32 : i32, i32
  }
  func.func @transform_11(%arg0: i32) -> (i32, i32) {
    %c0_i32 = arith.constant 0 : i32
    %c0_i32_0 = arith.constant 0 : i32
    return %arg0, %c0_i32 : i32, i32
  }
}

</mosaic_0001>

<bundles_post_ra>
// kernel: concept_bottleneck_forward.1
= control target key start
LH: loop header
LB: loop body
LE: loop exit
PB: predicated region body
PF: predicated region fallthrough
CT: control target
= control target key end

     0   :  { %17 = vsyncpa [#allocation3], 0  ;;  %s3608_s0 = inlined_call_operand.vmem [shape: f32[2,1024], index: 0, kind: input, shape index: {}]   ;;  %s3609_s1 = inlined_call_operand.vmem [shape: f32[1024,512], index: 1, kind: input, shape index: {}]   ;;  %s3610_s2 = inlined_call_operand.vmem [shape: f32[1,512], index: 2, kind: input, shape index: {}]   ;;  %s3611_s3 = inlined_call_operand.vmem [shape: f32[512,128], index: 3, kind: input, shape index: {}]   ;;  %s3612_s4 = inlined_call_operand.vmem [shape: f32[1,128], index: 4, kind: input, shape index: {}]   ;;  %s3613_s5 = inlined_call_operand.vmem [shape: f32[128,128], index: 5, kind: input, shape index: {}]   ;;  %s3614_s6 = inlined_call_operand.vmem [shape: f32[1,128], index: 6, kind: input, shape index: {}]   ;;  %s3615_s7 = inlined_call_operand.vmem [shape: f32[128,128], index: 7, kind: input, shape index: {}]   ;;  %s3616_s8 = inlined_call_operand.vmem [shape: f32[1,128], index: 8, kind: input, shape index: {}]   ;;  %s3617_s9 = inlined_call_operand.hbm [shape: f32[2,128], index: 9, kind: output, shape index: {0}]   ;;  %s3618_s10 = inlined_call_operand.hbm [shape: f32[2,128], index: 10, kind: output, shape index: {1}]   ;;  %s3619_s11 = inlined_call_operand.hbm [shape: f32[2,128], index: 11, kind: output, shape index: {2}]  }
   0x1   :  { %v99_v0 = vld [vmem:[%s3609_s1 + $0x1e0] sm:$0xff] }
   0x2   :  { %v163_v1 = vld [vmem:[%s3609_s1 + $0x3e0] sm:$0xff]  ;;  %582 = vmatpush.msra.mxu0 %v99_v0 }
   0x3   :  { %v227_v2 = vld [vmem:[%s3609_s1 + $0x5e0] sm:$0xff]  ;;  %602 = vmatpush.msra.mxu1 %v163_v1 }
   0x4   :  { %v95_v3 = vld [vmem:[%s3609_s1 + $0x1c0] sm:$0xff]  ;;  %622 = vmatpush.msra.mxu2 %v227_v2 }
   0x5   :  { %v159_v4 = vld [vmem:[%s3609_s1 + $0x3c0] sm:$0xff]  ;;  %583 = vmatpush.msra.mxu0 %v95_v3 }
   0x6   :  { %v223_v5 = vld [vmem:[%s3609_s1 + $0x5c0] sm:$0xff]  ;;  %603 = vmatpush.msra.mxu1 %v159_v4 }
   0x7   :  { %v291_v6 = vld [vmem:[%s3609_s1 + $0x7e0] sm:$0xff]  ;;  %623 = vmatpush.msra.mxu2 %v223_v5 }
   0x8   :  { %v91_v7 = vld [vmem:[%s3609_s1 + $0x1a0] sm:$0xff]  ;;  %642 = vmatpush.msra.mxu3 %v291_v6 }
   0x9   :  { %v155_v8 = vld [vmem:[%s3609_s1 + $0x3a0] sm:$0xff]  ;;  %584 = vmatpush.msra.mxu0 %v91_v7 }
   0xa   :  { %v219_v9 = vld [vmem:[%s3609_s1 + $0x5a0] sm:$0xff]  ;;  %604 = vmatpush.msra.mxu1 %v155_v8 }
   0xb   :  { %v287_v10 = vld [vmem:[%s3609_s1 + $0x7c0] sm:$0xff]  ;;  %624 = vmatpush.msra.mxu2 %v219_v9 }
   0xc   :  { %v87_v11 = vld [vmem:[%s3609_s1 + $0x180] sm:$0xff]  ;;  %643 = vmatpush.msra.mxu3 %v287_v10 }
   0xd   :  { %v151_v12 = vld [vmem:[%s3609_s1 + $0x380] sm:$0xff]  ;;  %585 = vmatpush.msra.mxu0 %v87_v11 }
   0xe   :  { %v215_v13 = vld [vmem:[%s3609_s1 + $0x580] sm:$0xff]  ;;  %605 = vmatpush.msra.mxu1 %v151_v12 }
   0xf   :  { %v283_v14 = vld [vmem:[%s3609_s1 + $0x7a0] sm:$0xff]  ;;  %625 = vmatpush.msra.mxu2 %v215_v13 }
  0x10   :  { %v83_v15 = vld [vmem:[%s3609_s1 + $0x160] sm:$0xff]  ;;  %644 = vmatpush.msra.mxu3 %v283_v14 }
  0x11   :  { %v147_v16 = vld [vmem:[%s3609_s1 + $0x360] sm:$0xff]  ;;  %586 = vmatpush.msra.mxu0 %v83_v15 }
  0x12   :  { %v211_v17 = vld [vmem:[%s3609_s1 + $0x560] sm:$0xff]  ;;  %606 = vmatpush.msra.mxu1 %v147_v16 }
  0x13   :  { %v279_v18 = vld [vmem:[%s3609_s1 + $0x780] sm:$0xff]  ;;  %626 = vmatpush.msra.mxu2 %v211_v17 }
  0x14   :  { %v79_v19 = vld [vmem:[%s3609_s1 + $0x140] sm:$0xff]  ;;  %645 = vmatpush.msra.mxu3 %v279_v18 }
  0x15   :  { %v143_v20 = vld [vmem:[%s3609_s1 + $0x340] sm:$0xff]  ;;  %587 = vmatpush.msra.mxu0 %v79_v19 }
  0x16   :  { %v207_v21 = vld [vmem:[%s3609_s1 + $0x540] sm:$0xff]  ;;  %607 = vmatpush.msra.mxu1 %v143_v20 }
  0x17   :  { %v275_v22 = vld [vmem:[%s3609_s1 + $0x760] sm:$0xff]  ;;  %627 = vmatpush.msra.mxu2 %v207_v21 }
  0x18   :  { %v75_v23 = vld [vmem:[%s3609_s1 + $0x120] sm:$0xff]  ;;  %646 = vmatpush.msra.mxu3 %v275_v22 }
  0x19   :  { %v139_v24 = vld [vmem:[%s3609_s1 + $0x320] sm:$0xff]  ;;  %588 = vmatpush.msra.mxu0 %v75_v23 }
  0x1a   :  { %v203_v25 = vld [vmem:[%s3609_s1 + $0x520] sm:$0xff]  ;;  %608 = vmatpush.msra.mxu1 %v139_v24 }
  0x1b   :  { %v271_v26 = vld [vmem:[%s3609_s1 + $0x740] sm:$0xff]  ;;  %628 = vmatpush.msra.mxu2 %v203_v25 }
  0x1c   :  { %v71_v27 = vld [vmem:[%s3609_s1 + $0x100] sm:$0xff]  ;;  %647 = vmatpush.msra.mxu3 %v271_v26 }
  0x1d   :  { %v135_v28 = vld [vmem:[%s3609_s1 + $0x300] sm:$0xff]  ;;  %589 = vmatpush.msra.mxu0 %v71_v27 }
  0x1e   :  { %v199_v29 = vld [vmem:[%s3609_s1 + $0x500] sm:$0xff]  ;;  %609 = vmatpush.msra.mxu1 %v135_v28 }
  0x1f   :  { %v267_v30 = vld [vmem:[%s3609_s1 + $0x720] sm:$0xff]  ;;  %629 = vmatpush.msra.mxu2 %v199_v29 }
  0x20   :  { %v67_v31 = vld [vmem:[%s3609_s1 + $0xe0] sm:$0xff]  ;;  %648 = vmatpush.msra.mxu3 %v267_v30 }
  0x21   :  { %v131_v32 = vld [vmem:[%s3609_s1 + $0x2e0] sm:$0xff]  ;;  %590 = vmatpush.msra.mxu0 %v67_v31 }
  0x22   :  { %v195_v33 = vld [vmem:[%s3609_s1 + $0x4e0] sm:$0xff]  ;;  %610 = vmatpush.msra.mxu1 %v131_v32 }
  0x23   :  { %v263_v34 = vld [vmem:[%s3609_s1 + $0x700] sm:$0xff]  ;;  %630 = vmatpush.msra.mxu2 %v195_v33 }
  0x24   :  { %v63_v35 = vld [vmem:[%s3609_s1 + $0xc0] sm:$0xff]  ;;  %649 = vmatpush.msra.mxu3 %v263_v34 }
  0x25   :  { %v127_v36 = vld [vmem:[%s3609_s1 + $0x2c0] sm:$0xff]  ;;  %591 = vmatpush.msra.mxu0 %v63_v35 }
  0x26   :  { %v191_v37 = vld [vmem:[%s3609_s1 + $0x4c0] sm:$0xff]  ;;  %611 = vmatpush.msra.mxu1 %v127_v36 }
  0x27   :  { %v259_v38 = vld [vmem:[%s3609_s1 + $0x6e0] sm:$0xff]  ;;  %631 = vmatpush.msra.mxu2 %v191_v37 }
  0x28   :  { %v59_v39 = vld [vmem:[%s3609_s1 + $0xa0] sm:$0xff]  ;;  %650 = vmatpush.msra.mxu3 %v259_v38  ;;  %v38_v38 = vld [vmem:[%s3608_s0 + $0x8] sm:$0xff] }
  0x29   :  { %v123_v40 = vld [vmem:[%s3609_s1 + $0x2a0] sm:$0xff]  ;;  %592 = vmatpush.msra.mxu0 %v59_v39  ;;  %565 = vst [vmem:[#allocation1 + $0x20] ss:$4 sm:$0xff] %v38_v38 }
  0x2a   :  { %v187_v41 = vld [vmem:[%s3609_s1 + $0x4a0] sm:$0xff]  ;;  %612 = vmatpush.msra.mxu1 %v123_v40 }
  0x2b   :  { %v255_v42 = vld [vmem:[%s3609_s1 + $0x6c0] sm:$0xff]  ;;  %632 = vmatpush.msra.mxu2 %v187_v41 }
  0x2c   :  { %v55_v43 = vld [vmem:[%s3609_s1 + $0x80] sm:$0xff]  ;;  %651 = vmatpush.msra.mxu3 %v255_v42 }
  0x2d   :  { %v119_v44 = vld [vmem:[%s3609_s1 + $0x280] sm:$0xff]  ;;  %593 = vmatpush.msra.mxu0 %v55_v43 }
  0x2e   :  { %v183_v45 = vld [vmem:[%s3609_s1 + $0x480] sm:$0xff]  ;;  %613 = vmatpush.msra.mxu1 %v119_v44 }
  0x2f   :  { %v251_v46 = vld [vmem:[%s3609_s1 + $0x6a0] sm:$0xff]  ;;  %633 = vmatpush.msra.mxu2 %v183_v45 }
  0x30   :  { %v51_v47 = vld [vmem:[%s3609_s1 + $0x60] sm:$0xff]  ;;  %652 = vmatpush.msra.mxu3 %v251_v46 }
  0x31   :  { %v115_v48 = vld [vmem:[%s3609_s1 + $0x260] sm:$0xff]  ;;  %594 = vmatpush.msra.mxu0 %v51_v47 }
  0x32   :  { %v179_v49 = vld [vmem:[%s3609_s1 + $0x460] sm:$0xff]  ;;  %614 = vmatpush.msra.mxu1 %v115_v48 }
  0x33   :  { %v247_v50 = vld [vmem:[%s3609_s1 + $0x680] sm:$0xff]  ;;  %634 = vmatpush.msra.mxu2 %v179_v49 }
  0x34   :  { %v47_v51 = vld [vmem:[%s3609_s1 + $0x40] sm:$0xff]  ;;  %653 = vmatpush.msra.mxu3 %v247_v50 }
  0x35   :  { %v111_v52 = vld [vmem:[%s3609_s1 + $0x240] sm:$0xff]  ;;  %595 = vmatpush.msra.mxu0 %v47_v51 }
  0x36   :  { %v175_v53 = vld [vmem:[%s3609_s1 + $0x440] sm:$0xff]  ;;  %615 = vmatpush.msra.mxu1 %v111_v52 }
  0x37   :  { %v243_v54 = vld [vmem:[%s3609_s1 + $0x660] sm:$0xff]  ;;  %635 = vmatpush.msra.mxu2 %v175_v53 }
  0x38   :  { %v43_v55 = vld [vmem:[%s3609_s1 + $0x20] sm:$0xff]  ;;  %654 = vmatpush.msra.mxu3 %v243_v54 }
  0x39   :  { %v107_v56 = vld [vmem:[%s3609_s1 + $0x220] sm:$0xff]  ;;  %596 = vmatpush.msra.mxu0 %v43_v55 }
  0x3a   :  { %v171_v57 = vld [vmem:[%s3609_s1 + $0x420] sm:$0xff]  ;;  %616 = vmatpush.msra.mxu1 %v107_v56 }
  0x3b   :  { %v239_v58 = vld [vmem:[%s3609_s1 + $0x640] sm:$0xff]  ;;  %636 = vmatpush.msra.mxu2 %v171_v57 }
  0x3c   :  { %v39_v59 = vld [vmem:[%s3609_s1] sm:$0xff]  ;;  %655 = vmatpush.msra.mxu3 %v239_v58 }
  0x3d   :  { %v103_v60 = vld [vmem:[%s3609_s1 + $0x200] sm:$0xff]  ;;  %597 = vmatpush.msra.mxu0 %v39_v59 }
  0x3e   :  { %v167_v61 = vld [vmem:[%s3609_s1 + $0x400] sm:$0xff]  ;;  %617 = vmatpush.msra.mxu1 %v103_v60 }
  0x3f   :  { %v235_v62 = vld [vmem:[%s3609_s1 + $0x620] sm:$0xff]  ;;  %637 = vmatpush.msra.mxu2 %v167_v61 }
  0x40   :  { %v355_v63 = vld [vmem:[%s3609_s1 + $0x9e0] sm:$0xff]  ;;  %656 = vmatpush.msra.mxu3 %v235_v62 }
  0x41   :  { %v419_v0 = vld [vmem:[%s3609_s1 + $0xbe0] sm:$0xff]  ;;  %662 = vmatpush.msrb.mxu0 %v355_v63 }
  0x42   :  { %v483_v1 = vld [vmem:[%s3609_s1 + $0xde0] sm:$0xff]  ;;  %682 = vmatpush.msrb.mxu1 %v419_v0 }
  0x43   :  { %v231_v2 = vld [vmem:[%s3609_s1 + $0x600] sm:$0xff]  ;;  %702 = vmatpush.msrb.mxu2 %v483_v1 }
  0x44   :  { %v351_v3 = vld [vmem:[%s3609_s1 + $0x9c0] sm:$0xff]  ;;  %657 = vmatpush.msra.mxu3 %v231_v2 }
  0x45   :  { %v415_v4 = vld [vmem:[%s3609_s1 + $0xbc0] sm:$0xff]  ;;  %663 = vmatpush.msrb.mxu0 %v351_v3 }
  0x46   :  { %v479_v5 = vld [vmem:[%s3609_s1 + $0xdc0] sm:$0xff]  ;;  %683 = vmatpush.msrb.mxu1 %v415_v4  ;;  %v100_v4 = vld [vmem:[%s3609_s1 + $0x1e8] sm:$0xff] }
  0x47   :  { %v547_v6 = vld [vmem:[%s3609_s1 + $0xfe0] sm:$0xff]  ;;  %703 = vmatpush.msrb.mxu2 %v479_v5  ;;  %v164_v5 = vld [vmem:[%s3609_s1 + $0x3e8] sm:$0xff] }
  0x48   :  { %v347_v7 = vld [vmem:[%s3609_s1 + $0x9a0] sm:$0xff]  ;;  %722 = vmatpush.msrb.mxu3 %v547_v6  ;;  %v228_v6 = vld [vmem:[%s3609_s1 + $0x5e8] sm:$0xff] }
  0x49   :  { %v411_v8 = vld [vmem:[%s3609_s1 + $0xba0] sm:$0xff]  ;;  %664 = vmatpush.msrb.mxu0 %v347_v7 }
  0x4a   :  { %v475_v9 = vld [vmem:[%s3609_s1 + $0xda0] sm:$0xff]  ;;  %684 = vmatpush.msrb.mxu1 %v411_v8  ;;  %v96_v8 = vld [vmem:[%s3609_s1 + $0x1c8] sm:$0xff] }
  0x4b   :  { %v543_v10 = vld [vmem:[%s3609_s1 + $0xfc0] sm:$0xff]  ;;  %704 = vmatpush.msrb.mxu2 %v475_v9 }
  0x4c   :  { %v343_v11 = vld [vmem:[%s3609_s1 + $0x980] sm:$0xff]  ;;  %723 = vmatpush.msrb.mxu3 %v543_v10  ;;  %v160_v10 = vld [vmem:[%s3609_s1 + $0x3c8] sm:$0xff] }
  0x4d   :  { %v407_v12 = vld [vmem:[%s3609_s1 + $0xb80] sm:$0xff]  ;;  %665 = vmatpush.msrb.mxu0 %v343_v11  ;;  %v224_v11 = vld [vmem:[%s3609_s1 + $0x5c8] sm:$0xff] }
  0x4e   :  { %v471_v13 = vld [vmem:[%s3609_s1 + $0xd80] sm:$0xff]  ;;  %685 = vmatpush.msrb.mxu1 %v407_v12  ;;  %v292_v12 = vld [vmem:[%s3609_s1 + $0x7e8] sm:$0xff] }
  0x4f   :  { %v539_v14 = vld [vmem:[%s3609_s1 + $0xfa0] sm:$0xff]  ;;  %705 = vmatpush.msrb.mxu2 %v471_v13  ;;  %v92_v13 = vld [vmem:[%s3609_s1 + $0x1a8] sm:$0xff] }
  0x50   :  { %v339_v15 = vld [vmem:[%s3609_s1 + $0x960] sm:$0xff]  ;;  %724 = vmatpush.msrb.mxu3 %v539_v14  ;;  %v156_v14 = vld [vmem:[%s3609_s1 + $0x3a8] sm:$0xff] }
  0x51   :  { %v403_v16 = vld [vmem:[%s3609_s1 + $0xb60] sm:$0xff]  ;;  %666 = vmatpush.msrb.mxu0 %v339_v15  ;;  %v220_v15 = vld [vmem:[%s3609_s1 + $0x5a8] sm:$0xff] }
  0x52   :  { %v467_v17 = vld [vmem:[%s3609_s1 + $0xd60] sm:$0xff]  ;;  %686 = vmatpush.msrb.mxu1 %v403_v16  ;;  %v288_v16 = vld [vmem:[%s3609_s1 + $0x7c8] sm:$0xff] }
  0x53   :  { %v535_v18 = vld [vmem:[%s3609_s1 + $0xf80] sm:$0xff]  ;;  %706 = vmatpush.msrb.mxu2 %v467_v17  ;;  %v88_v17 = vld [vmem:[%s3609_s1 + $0x188] sm:$0xff] }
  0x54   :  { %v335_v19 = vld [vmem:[%s3609_s1 + $0x940] sm:$0xff]  ;;  %725 = vmatpush.msrb.mxu3 %v535_v18  ;;  %v152_v18 = vld [vmem:[%s3609_s1 + $0x388] sm:$0xff] }
  0x55   :  { %v399_v20 = vld [vmem:[%s3609_s1 + $0xb40] sm:$0xff]  ;;  %667 = vmatpush.msrb.mxu0 %v335_v19  ;;  %v216_v19 = vld [vmem:[%s3609_s1 + $0x588] sm:$0xff] }
  0x56   :  { %v463_v21 = vld [vmem:[%s3609_s1 + $0xd40] sm:$0xff]  ;;  %687 = vmatpush.msrb.mxu1 %v399_v20  ;;  %v284_v20 = vld [vmem:[%s3609_s1 + $0x7a8] sm:$0xff] }
  0x57   :  { %v531_v22 = vld [vmem:[%s3609_s1 + $0xf60] sm:$0xff]  ;;  %707 = vmatpush.msrb.mxu2 %v463_v21  ;;  %v2125_v21 = vld.sshfl [vmem:[#allocation1 + $0x30] sm:$0xff pattern:$0x73625140] }
  0x58   :  { %v331_v23 = vld [vmem:[%s3609_s1 + $0x920] sm:$0xff]  ;;  %726 = vmatpush.msrb.mxu3 %v531_v22  ;;  %v84_v22 = vld [vmem:[%s3609_s1 + $0x168] sm:$0xff] }
  0x59   :  { %v395_v24 = vld [vmem:[%s3609_s1 + $0xb20] sm:$0xff]  ;;  %668 = vmatpush.msrb.mxu0 %v331_v23 }
  0x5a   :  { %v37_v25 = vld [vmem:[%s3608_s0] sm:$0xff]  ;;  %688 = vmatpush.msrb.mxu1 %v395_v24 }
  0x5b   :  { %v459_v26 = vld [vmem:[%s3609_s1 + $0xd20] sm:$0xff]  ;;  %563 = vst [vmem:[#allocation1] ss:$4 sm:$0xff] %v37_v25 }
  0x5c   :  { %v527_v27 = vld [vmem:[%s3609_s1 + $0xf40] sm:$0xff]  ;;  %708 = vmatpush.msrb.mxu2 %v459_v26 }
  0x5d   :  { %v327_v28 = vld [vmem:[%s3609_s1 + $0x900] sm:$0xff]  ;;  %727 = vmatpush.msrb.mxu3 %v527_v27 }
  0x5e   :  { %v391_v29 = vld [vmem:[%s3609_s1 + $0xb00] sm:$0xff]  ;;  %669 = vmatpush.msrb.mxu0 %v327_v28 }
  0x5f   :  { %v455_v30 = vld [vmem:[%s3609_s1 + $0xd00] sm:$0xff]  ;;  %689 = vmatpush.msrb.mxu1 %v391_v29 }
  0x60   :  { %v523_v31 = vld [vmem:[%s3609_s1 + $0xf20] sm:$0xff]  ;;  %709 = vmatpush.msrb.mxu2 %v455_v30 }
  0x61   :  { %v323_v32 = vld [vmem:[%s3609_s1 + $0x8e0] sm:$0xff]  ;;  %728 = vmatpush.msrb.mxu3 %v523_v31 }
  0x62   :  { %v387_v33 = vld [vmem:[%s3609_s1 + $0xae0] sm:$0xff]  ;;  %670 = vmatpush.msrb.mxu0 %v323_v32  ;;  %v2067_v2 = vld.sshfl [vmem:[#allocation1 + $0x8] sm:$0xff pattern:$0x73625140] }
  0x63   :  { %v451_v34 = vld [vmem:[%s3609_s1 + $0xce0] sm:$0xff]  ;;  %690 = vmatpush.msrb.mxu1 %v387_v33  ;;  %v2069_v3 = vld.sshfl [vmem:[#allocation1 + $0x10] sm:$0xff pattern:$0x73625140] }
  0x64   :  { %v519_v35 = vld [vmem:[%s3609_s1 + $0xf00] sm:$0xff]  ;;  %710 = vmatpush.msrb.mxu2 %v451_v34  ;;  %618 = vmatmul.f32.vlgmr.msra.gmra.mxu1 %v2067_v2  ;;  %v2089_v9 = vld.sshfl [vmem:[#allocation1 + $0x18] sm:$0xff pattern:$0x73625140] }
  0x65   :  { %v319_v36 = vld [vmem:[%s3609_s1 + $0x8c0] sm:$0xff]  ;;  %729 = vmatpush.msrb.mxu3 %v519_v35  ;;  %638 = vmatmul.f32.vlgmr.msra.gmra.mxu2 %v2069_v3 }
  0x66   :  { %v383_v37 = vld [vmem:[%s3609_s1 + $0xac0] sm:$0xff]  ;;  %671 = vmatpush.msrb.mxu0 %v319_v36  ;;  %658 = vmatmul.f32.vlgmr.msra.gmra.mxu3 %v2089_v9 }
  0x67   :  { %v447_v39 = vld [vmem:[%s3609_s1 + $0xcc0] sm:$0xff]  ;;  %691 = vmatpush.msrb.mxu1 %v383_v37 }
  0x68   :  { %v515_v40 = vld [vmem:[%s3609_s1 + $0xee0] sm:$0xff]  ;;  %711 = vmatpush.msrb.mxu2 %v447_v39 }
  0x69   :  { %v315_v41 = vld [vmem:[%s3609_s1 + $0x8a0] sm:$0xff]  ;;  %730 = vmatpush.msrb.mxu3 %v515_v40 }
  0x6a   :  { %v379_v42 = vld [vmem:[%s3609_s1 + $0xaa0] sm:$0xff]  ;;  %672 = vmatpush.msrb.mxu0 %v315_v41 }
  0x6b   :  { %v443_v43 = vld [vmem:[%s3609_s1 + $0xca0] sm:$0xff]  ;;  %692 = vmatpush.msrb.mxu1 %v379_v42 }
  0x6c   :  { %v511_v44 = vld [vmem:[%s3609_s1 + $0xec0] sm:$0xff]  ;;  %712 = vmatpush.msrb.mxu2 %v443_v43 }
  0x6d   :  { %v311_v45 = vld [vmem:[%s3609_s1 + $0x880] sm:$0xff]  ;;  %731 = vmatpush.msrb.mxu3 %v511_v44 }
  0x6e   :  { %v375_v46 = vld [vmem:[%s3609_s1 + $0xa80] sm:$0xff]  ;;  %673 = vmatpush.msrb.mxu0 %v311_v45 }
  0x6f   :  { %v439_v47 = vld [vmem:[%s3609_s1 + $0xc80] sm:$0xff]  ;;  %693 = vmatpush.msrb.mxu1 %v375_v46 }
  0x70   :  { %v507_v48 = vld [vmem:[%s3609_s1 + $0xea0] sm:$0xff]  ;;  %713 = vmatpush.msrb.mxu2 %v439_v47 }
  0x71   :  { %v307_v49 = vld [vmem:[%s3609_s1 + $0x860] sm:$0xff]  ;;  %732 = vmatpush.msrb.mxu3 %v507_v48 }
  0x72   :  { %v371_v50 = vld [vmem:[%s3609_s1 + $0xa60] sm:$0xff]  ;;  %674 = vmatpush.msrb.mxu0 %v307_v49 }
  0x73   :  { %v435_v51 = vld [vmem:[%s3609_s1 + $0xc60] sm:$0xff]  ;;  %694 = vmatpush.msrb.mxu1 %v371_v50 }
  0x74   :  { %v503_v52 = vld [vmem:[%s3609_s1 + $0xe80] sm:$0xff]  ;;  %714 = vmatpush.msrb.mxu2 %v435_v51 }
  0x75   :  { %v303_v53 = vld [vmem:[%s3609_s1 + $0x840] sm:$0xff]  ;;  %733 = vmatpush.msrb.mxu3 %v503_v52 }
  0x76   :  { %v367_v54 = vld [vmem:[%s3609_s1 + $0xa40] sm:$0xff]  ;;  %675 = vmatpush.msrb.mxu0 %v303_v53 }
  0x77   :  { %v431_v55 = vld [vmem:[%s3609_s1 + $0xc40] sm:$0xff]  ;;  %695 = vmatpush.msrb.mxu1 %v367_v54 }
  0x78   :  { %v499_v56 = vld [vmem:[%s3609_s1 + $0xe60] sm:$0xff]  ;;  %715 = vmatpush.msrb.mxu2 %v431_v55 }
  0x79   :  { %v299_v57 = vld [vmem:[%s3609_s1 + $0x820] sm:$0xff]  ;;  %734 = vmatpush.msrb.mxu3 %v499_v56 }
  0x7a   :  { %v363_v58 = vld [vmem:[%s3609_s1 + $0xa20] sm:$0xff]  ;;  %676 = vmatpush.msrb.mxu0 %v299_v57 }
  0x7b   :  { %v427_v59 = vld [vmem:[%s3609_s1 + $0xc20] sm:$0xff]  ;;  %696 = vmatpush.msrb.mxu1 %v363_v58 }
  0x7c   :  { %v495_v60 = vld [vmem:[%s3609_s1 + $0xe40] sm:$0xff]  ;;  %716 = vmatpush.msrb.mxu2 %v427_v59 }
  0x7d   :  { %v295_v61 = vld [vmem:[%s3609_s1 + $0x800] sm:$0xff]  ;;  %735 = vmatpush.msrb.mxu3 %v495_v60 }
  0x7e   :  { %v359_v62 = vld [vmem:[%s3609_s1 + $0xa00] sm:$0xff]  ;;  %677 = vmatpush.msrb.mxu0 %v295_v61 }
  0x7f   :  { %v423_v63 = vld [vmem:[%s3609_s1 + $0xc00] sm:$0xff]  ;;  %697 = vmatpush.msrb.mxu1 %v359_v62 }
  0x80   :  { %v491_v0 = vld [vmem:[%s3609_s1 + $0xe20] sm:$0xff]  ;;  %717 = vmatpush.msrb.mxu2 %v423_v63 }
  0x81   :  { %v2065_v1 = vld.sshfl [vmem:[#allocation1] sm:$0xff pattern:$0x73625140]  ;;  %736 = vmatpush.msrb.mxu3 %v491_v0  ;;  %762 = vmatpush.msra.mxu1 %v164_v5 }
  0x82   :  { %598 = vmatmul.f32.vlgmr.msra.gmra.mxu0 %v2065_v1  ;;  %v487_v7 = vld [vmem:[%s3609_s1 + $0xe00] sm:$0xff]  ;;  %782 = vmatpush.msra.mxu2 %v228_v6 }
  0x83   :  { %742 = vmatpush.msra.mxu0 %v100_v4  ;;  %737 = vmatpush.msrb.mxu3 %v487_v7 }
  0x84   :  { %763 = vmatpush.msra.mxu1 %v160_v10  ;;  %783 = vmatpush.msra.mxu2 %v224_v11 }
  0x85   :  { %743 = vmatpush.msra.mxu0 %v96_v8  ;;  %802 = vmatpush.msra.mxu3 %v292_v12 }
  0x86   :  { %764 = vmatpush.msra.mxu1 %v156_v14  ;;  %784 = vmatpush.msra.mxu2 %v220_v15 }
  0x87   :  { %744 = vmatpush.msra.mxu0 %v92_v13  ;;  %803 = vmatpush.msra.mxu3 %v288_v16 }
  0x88   :  { %18 = vsyncpa [#allocation5], 0  ;;  %765 = vmatpush.msra.mxu1 %v152_v18  ;;  %v148_v23 = vld [vmem:[%s3609_s1 + $0x368] sm:$0xff]  ;;  %785 = vmatpush.msra.mxu2 %v216_v19  ;;  %v2139_v26 = vld.sshfl [vmem:[#allocation1 + $0x20] sm:$0xff pattern:$0x73625140] }
  0x89   :  { %745 = vmatpush.msra.mxu0 %v88_v17  ;;  %v212_v24 = vld [vmem:[%s3609_s1 + $0x568] sm:$0xff]  ;;  %804 = vmatpush.msra.mxu3 %v284_v20  ;;  %v2142_v27 = vld.sshfl [vmem:[#allocation1 + $0x38] sm:$0xff pattern:$0x73625140]  ;;  %s1491_s30 = sshll.u32 %s3618_s10, 4  ;;  %s1616_s12 = smov [#allocation6]   ;;  %s1492_s30 = int_to_ptr.hbm [resolvable:$true] %s1491_s30 }
  0x8a   :  { %v280_v25 = vld [vmem:[%s3609_s1 + $0x788] sm:$0xff]  ;;  %718 = vmatmul.f32.vlgmr.msrb.gmra.mxu2 %v2125_v21  ;;  %766 = vmatpush.msra.mxu1 %v148_v23  ;;  %s1500_s13 = sshll.u32 %s1616_s12, 4  ;;  %s1502_s14 = sshll.u32 %s3619_s11, 4  ;;  %s1501_s13 = int_to_ptr.vmem [resolvable:$true] %s1500_s13  ;;  %s1503_s14 = int_to_ptr.hbm [resolvable:$true] %s1502_s14 }
  0x8b   :  { %746 = vmatpush.msra.mxu0 %v84_v22  ;;  %v80_v28 = vld [vmem:[%s3609_s1 + $0x148] sm:$0xff]  ;;  %786 = vmatpush.msra.mxu2 %v212_v24  ;;  %s1617_s17 = smov [#allocation2]   ;;  %s1480_s20 = sshll.u32 %s3617_s9, 4  ;;  %s1481_s20 = int_to_ptr.hbm [resolvable:$true] %s1480_s20 }
  0x8c   :  { %v144_v29 = vld [vmem:[%s3609_s1 + $0x348] sm:$0xff]  ;;  %805 = vmatpush.msra.mxu3 %v280_v25  ;;  %678 = vmatmul.f32.vlgmr.msrb.gmra.mxu0 %v2139_v26  ;;  %s1478_s10 = sshll.u32 %s1617_s17, 4  ;;  %s1479_s10 = int_to_ptr.vmem [resolvable:$true] %s1478_s10 }
  0x8d   :  { %v208_v30 = vld [vmem:[%s3609_s1 + $0x548] sm:$0xff]  ;;  %738 = vmatmul.f32.vlgmr.msrb.gmra.mxu3 %v2142_v27  ;;  %747 = vmatpush.msra.mxu0 %v80_v28 }
  0x8e   :  { %v276_v31 = vld [vmem:[%s3609_s1 + $0x768] sm:$0xff]  ;;  %767 = vmatpush.msra.mxu1 %v144_v29  ;;  %787 = vmatpush.msra.mxu2 %v208_v30 }
  0x8f   :  { %v2157_v32 = vld.sshfl [vmem:[#allocation1 + $0x28] sm:$0xff pattern:$0x73625140]  ;;  %806 = vmatpush.msra.mxu3 %v276_v31 }
  0x90   :  { %v76_v33 = vld [vmem:[%s3609_s1 + $0x128] sm:$0xff]  ;;  %698 = vmatmul.f32.vlgmr.msrb.gmra.mxu1 %v2157_v32 }
  0x91   :  { %v140_v34 = vld [vmem:[%s3609_s1 + $0x328] sm:$0xff]  ;;  %748 = vmatpush.msra.mxu0 %v76_v33 }
  0x92   :  { %v204_v35 = vld [vmem:[%s3609_s1 + $0x528] sm:$0xff]  ;;  %768 = vmatpush.msra.mxu1 %v140_v34 }
  0x93   :  { %v272_v36 = vld [vmem:[%s3609_s1 + $0x748] sm:$0xff]  ;;  %788 = vmatpush.msra.mxu2 %v204_v35 }
  0x94   :  { %v72_v37 = vld [vmem:[%s3609_s1 + $0x108] sm:$0xff]  ;;  %807 = vmatpush.msra.mxu3 %v272_v36 }
  0x95   :  { %v136_v38 = vld [vmem:[%s3609_s1 + $0x308] sm:$0xff]  ;;  %749 = vmatpush.msra.mxu0 %v72_v37 }
  0x96   :  { %v200_v39 = vld [vmem:[%s3609_s1 + $0x508] sm:$0xff]  ;;  %769 = vmatpush.msra.mxu1 %v136_v38 }
  0x97   :  { %v268_v40 = vld [vmem:[%s3609_s1 + $0x728] sm:$0xff]  ;;  %789 = vmatpush.msra.mxu2 %v200_v39 }
  0x98   :  { %v68_v41 = vld [vmem:[%s3609_s1 + $0xe8] sm:$0xff]  ;;  %808 = vmatpush.msra.mxu3 %v268_v40 }
  0x99   :  { %v132_v42 = vld [vmem:[%s3609_s1 + $0x2e8] sm:$0xff]  ;;  %750 = vmatpush.msra.mxu0 %v68_v41 }
  0x9a   :  { %v196_v43 = vld [vmem:[%s3609_s1 + $0x4e8] sm:$0xff]  ;;  %770 = vmatpush.msra.mxu1 %v132_v42 }
  0x9b   :  { %v264_v44 = vld [vmem:[%s3609_s1 + $0x708] sm:$0xff]  ;;  %790 = vmatpush.msra.mxu2 %v196_v43 }
  0x9c   :  { %v64_v45 = vld [vmem:[%s3609_s1 + $0xc8] sm:$0xff]  ;;  %809 = vmatpush.msra.mxu3 %v264_v44 }
  0x9d   :  { %v128_v46 = vld [vmem:[%s3609_s1 + $0x2c8] sm:$0xff]  ;;  %751 = vmatpush.msra.mxu0 %v64_v45 }
  0x9e   :  { %v192_v47 = vld [vmem:[%s3609_s1 + $0x4c8] sm:$0xff]  ;;  %771 = vmatpush.msra.mxu1 %v128_v46 }
  0x9f   :  { %v260_v48 = vld [vmem:[%s3609_s1 + $0x6e8] sm:$0xff]  ;;  %791 = vmatpush.msra.mxu2 %v192_v47 }
  0xa0   :  { %v60_v49 = vld [vmem:[%s3609_s1 + $0xa8] sm:$0xff]  ;;  %810 = vmatpush.msra.mxu3 %v260_v48 }
  0xa1   :  { %v124_v50 = vld [vmem:[%s3609_s1 + $0x2a8] sm:$0xff]  ;;  %752 = vmatpush.msra.mxu0 %v60_v49 }
  0xa2   :  { %v188_v51 = vld [vmem:[%s3609_s1 + $0x4a8] sm:$0xff]  ;;  %772 = vmatpush.msra.mxu1 %v124_v50 }
  0xa3   :  { %v256_v52 = vld [vmem:[%s3609_s1 + $0x6c8] sm:$0xff]  ;;  %792 = vmatpush.msra.mxu2 %v188_v51 }
  0xa4   :  { %v56_v53 = vld [vmem:[%s3609_s1 + $0x88] sm:$0xff]  ;;  %811 = vmatpush.msra.mxu3 %v256_v52 }
  0xa5   :  { %v120_v54 = vld [vmem:[%s3609_s1 + $0x288] sm:$0xff]  ;;  %753 = vmatpush.msra.mxu0 %v56_v53 }
  0xa6   :  { %v184_v55 = vld [vmem:[%s3609_s1 + $0x488] sm:$0xff]  ;;  %773 = vmatpush.msra.mxu1 %v120_v54 }
  0xa7   :  { %v252_v56 = vld [vmem:[%s3609_s1 + $0x6a8] sm:$0xff]  ;;  %793 = vmatpush.msra.mxu2 %v184_v55 }
  0xa8   :  { %v52_v57 = vld [vmem:[%s3609_s1 + $0x68] sm:$0xff]  ;;  %812 = vmatpush.msra.mxu3 %v252_v56 }
  0xa9   :  { %v116_v58 = vld [vmem:[%s3609_s1 + $0x268] sm:$0xff]  ;;  %754 = vmatpush.msra.mxu0 %v52_v57 }
  0xaa   :  { %v180_v59 = vld [vmem:[%s3609_s1 + $0x468] sm:$0xff]  ;;  %774 = vmatpush.msra.mxu1 %v116_v58 }
  0xab   :  { %v248_v60 = vld [vmem:[%s3609_s1 + $0x688] sm:$0xff]  ;;  %794 = vmatpush.msra.mxu2 %v180_v59 }
  0xac   :  { %v48_v61 = vld [vmem:[%s3609_s1 + $0x48] sm:$0xff]  ;;  %813 = vmatpush.msra.mxu3 %v248_v60 }
  0xad   :  { %v112_v62 = vld [vmem:[%s3609_s1 + $0x248] sm:$0xff]  ;;  %755 = vmatpush.msra.mxu0 %v48_v61 }
  0xae   :  { %v176_v63 = vld [vmem:[%s3609_s1 + $0x448] sm:$0xff]  ;;  %775 = vmatpush.msra.mxu1 %v112_v62 }
  0xaf   :  { %v244_v0 = vld [vmem:[%s3609_s1 + $0x668] sm:$0xff]  ;;  %795 = vmatpush.msra.mxu2 %v176_v63 }
  0xb0   :  { %v44_v4 = vld [vmem:[%s3609_s1 + $0x28] sm:$0xff]  ;;  %814 = vmatpush.msra.mxu3 %v244_v0 }
  0xb1   :  { %v108_v5 = vld [vmem:[%s3609_s1 + $0x228] sm:$0xff]  ;;  %756 = vmatpush.msra.mxu0 %v44_v4 }
  0xb2   :  { %v172_v6 = vld [vmem:[%s3609_s1 + $0x428] sm:$0xff]  ;;  %776 = vmatpush.msra.mxu1 %v108_v5 }
  0xb3   :  { %v240_v7 = vld [vmem:[%s3609_s1 + $0x648] sm:$0xff]  ;;  %796 = vmatpush.msra.mxu2 %v172_v6 }
  0xb4   :  { %v40_v8 = vld [vmem:[%s3609_s1 + $0x8] sm:$0xff]  ;;  %815 = vmatpush.msra.mxu3 %v240_v7 }
  0xb5   :  { %v104_v10 = vld [vmem:[%s3609_s1 + $0x208] sm:$0xff]  ;;  %757 = vmatpush.msra.mxu0 %v40_v8 }
  0xb6   :  { %v168_v11 = vld [vmem:[%s3609_s1 + $0x408] sm:$0xff]  ;;  %777 = vmatpush.msra.mxu1 %v104_v10  ;;  %758 = vmatmul.f32.vlgmr.msra.gmra.mxu0 %v2065_v1  ;;  %v225_v1 = vld [vmem:[%s3609_s1 + $0x5d0] sm:$0xff] }
  0xb7   :  { %v236_v12 = vld [vmem:[%s3609_s1 + $0x628] sm:$0xff]  ;;  %797 = vmatpush.msra.mxu2 %v168_v11  ;;  %778 = vmatmul.f32.vlgmr.msra.gmra.mxu1 %v2067_v2  ;;  %v293_v2 = vld [vmem:[%s3609_s1 + $0x7f0] sm:$0xff] }
  0xb8   :  { %v356_v13 = vld [vmem:[%s3609_s1 + $0x9e8] sm:$0xff]  ;;  %816 = vmatpush.msra.mxu3 %v236_v12  ;;  %798 = vmatmul.f32.vlgmr.msra.gmra.mxu2 %v2069_v3  ;;  %v93_v3 = vld [vmem:[%s3609_s1 + $0x1b0] sm:$0xff] }
  0xb9   :  { %v420_v14 = vld [vmem:[%s3609_s1 + $0xbe8] sm:$0xff]  ;;  %822 = vmatpush.msrb.mxu0 %v356_v13 }
  0xba   :  { %v484_v15 = vld [vmem:[%s3609_s1 + $0xde8] sm:$0xff]  ;;  %842 = vmatpush.msrb.mxu1 %v420_v14 }
  0xbb   :  { %v232_v16 = vld [vmem:[%s3609_s1 + $0x608] sm:$0xff]  ;;  %862 = vmatpush.msrb.mxu2 %v484_v15 }
  0xbc   :  { %v352_v17 = vld [vmem:[%s3609_s1 + $0x9c8] sm:$0xff]  ;;  %817 = vmatpush.msra.mxu3 %v232_v16 }
  0xbd   :  { %v416_v18 = vld [vmem:[%s3609_s1 + $0xbc8] sm:$0xff]  ;;  %823 = vmatpush.msrb.mxu0 %v352_v17  ;;  %818 = vmatmul.f32.vlgmr.msra.gmra.mxu3 %v2089_v9 }
  0xbe   :  { %v480_v19 = vld [vmem:[%s3609_s1 + $0xdc8] sm:$0xff]  ;;  %843 = vmatpush.msrb.mxu1 %v416_v18 }
  0xbf   :  { %v548_v20 = vld [vmem:[%s3609_s1 + $0xfe8] sm:$0xff]  ;;  %863 = vmatpush.msrb.mxu2 %v480_v19 }
  0xc0   :  { %v348_v22 = vld [vmem:[%s3609_s1 + $0x9a8] sm:$0xff]  ;;  %882 = vmatpush.msrb.mxu3 %v548_v20 }
  0xc1   :  { %v412_v23 = vld [vmem:[%s3609_s1 + $0xba8] sm:$0xff]  ;;  %824 = vmatpush.msrb.mxu0 %v348_v22  ;;  %v101_v22 = vld [vmem:[%s3609_s1 + $0x1f0] sm:$0xff] }
  0xc2   :  { %v476_v24 = vld [vmem:[%s3609_s1 + $0xda8] sm:$0xff]  ;;  %844 = vmatpush.msrb.mxu1 %v412_v23  ;;  %v165_v23 = vld [vmem:[%s3609_s1 + $0x3f0] sm:$0xff] }
  0xc3   :  { %v544_v25 = vld [vmem:[%s3609_s1 + $0xfc8] sm:$0xff]  ;;  %864 = vmatpush.msrb.mxu2 %v476_v24  ;;  %v229_v24 = vld [vmem:[%s3609_s1 + $0x5f0] sm:$0xff] }
  0xc4   :  { %v344_v28 = vld [vmem:[%s3609_s1 + $0x988] sm:$0xff]  ;;  %883 = vmatpush.msrb.mxu3 %v544_v25 }
  0xc5   :  { %v408_v29 = vld [vmem:[%s3609_s1 + $0xb88] sm:$0xff]  ;;  %825 = vmatpush.msrb.mxu0 %v344_v28  ;;  %v97_v28 = vld [vmem:[%s3609_s1 + $0x1d0] sm:$0xff] }
  0xc6   :  { %v472_v30 = vld [vmem:[%s3609_s1 + $0xd88] sm:$0xff]  ;;  %845 = vmatpush.msrb.mxu1 %v408_v29  ;;  %v161_v29 = vld [vmem:[%s3609_s1 + $0x3d0] sm:$0xff] }
  0xc7   :  { %v540_v31 = vld [vmem:[%s3609_s1 + $0xfa8] sm:$0xff]  ;;  %865 = vmatpush.msrb.mxu2 %v472_v30  ;;  %v157_v30 = vld [vmem:[%s3609_s1 + $0x3b0] sm:$0xff] }
  0xc8   :  { %v340_v33 = vld [vmem:[%s3609_s1 + $0x968] sm:$0xff]  ;;  %884 = vmatpush.msrb.mxu3 %v540_v31  ;;  %v221_v31 = vld [vmem:[%s3609_s1 + $0x5b0] sm:$0xff] }
  0xc9   :  { %v404_v34 = vld [vmem:[%s3609_s1 + $0xb68] sm:$0xff]  ;;  %826 = vmatpush.msrb.mxu0 %v340_v33  ;;  %v289_v33 = vld [vmem:[%s3609_s1 + $0x7d0] sm:$0xff] }
  0xca   :  { %v468_v35 = vld [vmem:[%s3609_s1 + $0xd68] sm:$0xff]  ;;  %846 = vmatpush.msrb.mxu1 %v404_v34  ;;  %v89_v34 = vld [vmem:[%s3609_s1 + $0x190] sm:$0xff] }
  0xcb   :  { %v536_v36 = vld [vmem:[%s3609_s1 + $0xf88] sm:$0xff]  ;;  %866 = vmatpush.msrb.mxu2 %v468_v35  ;;  %v153_v35 = vld [vmem:[%s3609_s1 + $0x390] sm:$0xff] }
  0xcc   :  { %v336_v37 = vld [vmem:[%s3609_s1 + $0x948] sm:$0xff]  ;;  %885 = vmatpush.msrb.mxu3 %v536_v36  ;;  %v217_v36 = vld [vmem:[%s3609_s1 + $0x590] sm:$0xff] }
  0xcd   :  { %v400_v38 = vld [vmem:[%s3609_s1 + $0xb48] sm:$0xff]  ;;  %827 = vmatpush.msrb.mxu0 %v336_v37  ;;  %v285_v37 = vld [vmem:[%s3609_s1 + $0x7b0] sm:$0xff] }
  0xce   :  { %v464_v39 = vld [vmem:[%s3609_s1 + $0xd48] sm:$0xff]  ;;  %847 = vmatpush.msrb.mxu1 %v400_v38  ;;  %v85_v38 = vld [vmem:[%s3609_s1 + $0x170] sm:$0xff] }
  0xcf   :  { %v532_v40 = vld [vmem:[%s3609_s1 + $0xf68] sm:$0xff]  ;;  %867 = vmatpush.msrb.mxu2 %v464_v39  ;;  %v149_v39 = vld [vmem:[%s3609_s1 + $0x370] sm:$0xff] }
  0xd0   :  { %v332_v41 = vld [vmem:[%s3609_s1 + $0x928] sm:$0xff]  ;;  %886 = vmatpush.msrb.mxu3 %v532_v40  ;;  %v213_v40 = vld [vmem:[%s3609_s1 + $0x570] sm:$0xff] }
  0xd1   :  { %v396_v42 = vld [vmem:[%s3609_s1 + $0xb28] sm:$0xff]  ;;  %828 = vmatpush.msrb.mxu0 %v332_v41  ;;  %v281_v41 = vld [vmem:[%s3609_s1 + $0x790] sm:$0xff] }
  0xd2   :  { %v460_v43 = vld [vmem:[%s3609_s1 + $0xd28] sm:$0xff]  ;;  %848 = vmatpush.msrb.mxu1 %v396_v42  ;;  %v81_v42 = vld [vmem:[%s3609_s1 + $0x150] sm:$0xff] }
  0xd3   :  { %v528_v44 = vld [vmem:[%s3609_s1 + $0xf48] sm:$0xff]  ;;  %868 = vmatpush.msrb.mxu2 %v460_v43  ;;  %v145_v43 = vld [vmem:[%s3609_s1 + $0x350] sm:$0xff] }
  0xd4   :  { %v328_v45 = vld [vmem:[%s3609_s1 + $0x908] sm:$0xff]  ;;  %887 = vmatpush.msrb.mxu3 %v528_v44  ;;  %v209_v44 = vld [vmem:[%s3609_s1 + $0x550] sm:$0xff] }
  0xd5   :  { %v392_v46 = vld [vmem:[%s3609_s1 + $0xb08] sm:$0xff]  ;;  %829 = vmatpush.msrb.mxu0 %v328_v45  ;;  %v277_v45 = vld [vmem:[%s3609_s1 + $0x770] sm:$0xff] }
  0xd6   :  { %v456_v47 = vld [vmem:[%s3609_s1 + $0xd08] sm:$0xff]  ;;  %849 = vmatpush.msrb.mxu1 %v392_v46  ;;  %v77_v46 = vld [vmem:[%s3609_s1 + $0x130] sm:$0xff] }
  0xd7   :  { %v524_v48 = vld [vmem:[%s3609_s1 + $0xf28] sm:$0xff]  ;;  %869 = vmatpush.msrb.mxu2 %v456_v47  ;;  %v141_v47 = vld [vmem:[%s3609_s1 + $0x330] sm:$0xff] }
  0xd8   :  { %v324_v49 = vld [vmem:[%s3609_s1 + $0x8e8] sm:$0xff]  ;;  %888 = vmatpush.msrb.mxu3 %v524_v48  ;;  %v205_v48 = vld [vmem:[%s3609_s1 + $0x530] sm:$0xff] }
  0xd9   :  { %v388_v50 = vld [vmem:[%s3609_s1 + $0xae8] sm:$0xff]  ;;  %830 = vmatpush.msrb.mxu0 %v324_v49  ;;  %v273_v49 = vld [vmem:[%s3609_s1 + $0x750] sm:$0xff] }
  0xda   :  { %v452_v51 = vld [vmem:[%s3609_s1 + $0xce8] sm:$0xff]  ;;  %850 = vmatpush.msrb.mxu1 %v388_v50  ;;  %v73_v50 = vld [vmem:[%s3609_s1 + $0x110] sm:$0xff] }
  0xdb   :  { %v520_v52 = vld [vmem:[%s3609_s1 + $0xf08] sm:$0xff]  ;;  %870 = vmatpush.msrb.mxu2 %v452_v51  ;;  %v137_v51 = vld [vmem:[%s3609_s1 + $0x310] sm:$0xff] }
  0xdc   :  { %v320_v53 = vld [vmem:[%s3609_s1 + $0x8c8] sm:$0xff]  ;;  %889 = vmatpush.msrb.mxu3 %v520_v52  ;;  %v201_v52 = vld [vmem:[%s3609_s1 + $0x510] sm:$0xff] }
  0xdd   :  { %v384_v54 = vld [vmem:[%s3609_s1 + $0xac8] sm:$0xff]  ;;  %831 = vmatpush.msrb.mxu0 %v320_v53  ;;  %v269_v53 = vld [vmem:[%s3609_s1 + $0x730] sm:$0xff] }
  0xde   :  { %v448_v55 = vld [vmem:[%s3609_s1 + $0xcc8] sm:$0xff]  ;;  %851 = vmatpush.msrb.mxu1 %v384_v54  ;;  %v69_v54 = vld [vmem:[%s3609_s1 + $0xf0] sm:$0xff] }
  0xdf   :  { %v516_v56 = vld [vmem:[%s3609_s1 + $0xee8] sm:$0xff]  ;;  %871 = vmatpush.msrb.mxu2 %v448_v55  ;;  %v133_v55 = vld [vmem:[%s3609_s1 + $0x2f0] sm:$0xff] }
  0xe0   :  { %v316_v57 = vld [vmem:[%s3609_s1 + $0x8a8] sm:$0xff]  ;;  %890 = vmatpush.msrb.mxu3 %v516_v56  ;;  %v197_v56 = vld [vmem:[%s3609_s1 + $0x4f0] sm:$0xff] }
  0xe1   :  { %v380_v58 = vld [vmem:[%s3609_s1 + $0xaa8] sm:$0xff]  ;;  %832 = vmatpush.msrb.mxu0 %v316_v57  ;;  %v265_v57 = vld [vmem:[%s3609_s1 + $0x710] sm:$0xff] }
  0xe2   :  { %v444_v59 = vld [vmem:[%s3609_s1 + $0xca8] sm:$0xff]  ;;  %852 = vmatpush.msrb.mxu1 %v380_v58  ;;  %v65_v58 = vld [vmem:[%s3609_s1 + $0xd0] sm:$0xff] }
  0xe3   :  { %v512_v60 = vld [vmem:[%s3609_s1 + $0xec8] sm:$0xff]  ;;  %872 = vmatpush.msrb.mxu2 %v444_v59  ;;  %v129_v59 = vld [vmem:[%s3609_s1 + $0x2d0] sm:$0xff] }
  0xe4   :  { %v312_v61 = vld [vmem:[%s3609_s1 + $0x888] sm:$0xff]  ;;  %891 = vmatpush.msrb.mxu3 %v512_v60  ;;  %v193_v60 = vld [vmem:[%s3609_s1 + $0x4d0] sm:$0xff] }
  0xe5   :  { %v376_v62 = vld [vmem:[%s3609_s1 + $0xa88] sm:$0xff]  ;;  %833 = vmatpush.msrb.mxu0 %v312_v61  ;;  %v261_v61 = vld [vmem:[%s3609_s1 + $0x6f0] sm:$0xff] }
  0xe6   :  { %v440_v63 = vld [vmem:[%s3609_s1 + $0xc88] sm:$0xff]  ;;  %853 = vmatpush.msrb.mxu1 %v376_v62  ;;  %v61_v62 = vld [vmem:[%s3609_s1 + $0xb0] sm:$0xff] }
  0xe7   :  { %v508_v0 = vld [vmem:[%s3609_s1 + $0xea8] sm:$0xff]  ;;  %873 = vmatpush.msrb.mxu2 %v440_v63  ;;  %v125_v63 = vld [vmem:[%s3609_s1 + $0x2b0] sm:$0xff] }
  0xe8   :  { %v308_v4 = vld [vmem:[%s3609_s1 + $0x868] sm:$0xff]  ;;  %892 = vmatpush.msrb.mxu3 %v508_v0  ;;  %v189_v0 = vld [vmem:[%s3609_s1 + $0x4b0] sm:$0xff] }
  0xe9   :  { %v372_v5 = vld [vmem:[%s3609_s1 + $0xa68] sm:$0xff]  ;;  %834 = vmatpush.msrb.mxu0 %v308_v4  ;;  %v257_v4 = vld [vmem:[%s3609_s1 + $0x6d0] sm:$0xff] }
  0xea   :  { %v436_v6 = vld [vmem:[%s3609_s1 + $0xc68] sm:$0xff]  ;;  %854 = vmatpush.msrb.mxu1 %v372_v5  ;;  %v57_v5 = vld [vmem:[%s3609_s1 + $0x90] sm:$0xff] }
  0xeb   :  { %v504_v7 = vld [vmem:[%s3609_s1 + $0xe88] sm:$0xff]  ;;  %874 = vmatpush.msrb.mxu2 %v436_v6  ;;  %v121_v6 = vld [vmem:[%s3609_s1 + $0x290] sm:$0xff] }
  0xec   :  { %v304_v8 = vld [vmem:[%s3609_s1 + $0x848] sm:$0xff]  ;;  %893 = vmatpush.msrb.mxu3 %v504_v7  ;;  %v185_v7 = vld [vmem:[%s3609_s1 + $0x490] sm:$0xff] }
  0xed   :  { %v368_v10 = vld [vmem:[%s3609_s1 + $0xa48] sm:$0xff]  ;;  %835 = vmatpush.msrb.mxu0 %v304_v8  ;;  %v253_v8 = vld [vmem:[%s3609_s1 + $0x6b0] sm:$0xff] }
  0xee   :  { %v432_v11 = vld [vmem:[%s3609_s1 + $0xc48] sm:$0xff]  ;;  %855 = vmatpush.msrb.mxu1 %v368_v10  ;;  %v53_v10 = vld [vmem:[%s3609_s1 + $0x70] sm:$0xff] }
  0xef   :  { %v500_v12 = vld [vmem:[%s3609_s1 + $0xe68] sm:$0xff]  ;;  %875 = vmatpush.msrb.mxu2 %v432_v11  ;;  %v117_v11 = vld [vmem:[%s3609_s1 + $0x270] sm:$0xff] }
  0xf0   :  { %v300_v13 = vld [vmem:[%s3609_s1 + $0x828] sm:$0xff]  ;;  %894 = vmatpush.msrb.mxu3 %v500_v12  ;;  %v181_v12 = vld [vmem:[%s3609_s1 + $0x470] sm:$0xff] }
  0xf1   :  { %v364_v14 = vld [vmem:[%s3609_s1 + $0xa28] sm:$0xff]  ;;  %836 = vmatpush.msrb.mxu0 %v300_v13  ;;  %v249_v13 = vld [vmem:[%s3609_s1 + $0x690] sm:$0xff] }
  0xf2   :  { %v428_v15 = vld [vmem:[%s3609_s1 + $0xc28] sm:$0xff]  ;;  %856 = vmatpush.msrb.mxu1 %v364_v14  ;;  %v49_v14 = vld [vmem:[%s3609_s1 + $0x50] sm:$0xff] }
  0xf3   :  { %v496_v16 = vld [vmem:[%s3609_s1 + $0xe48] sm:$0xff]  ;;  %876 = vmatpush.msrb.mxu2 %v428_v15  ;;  %v113_v15 = vld [vmem:[%s3609_s1 + $0x250] sm:$0xff] }
  0xf4   :  { %v296_v17 = vld [vmem:[%s3609_s1 + $0x808] sm:$0xff]  ;;  %895 = vmatpush.msrb.mxu3 %v496_v16  ;;  %v177_v16 = vld [vmem:[%s3609_s1 + $0x450] sm:$0xff] }
  0xf5   :  { %v360_v18 = vld [vmem:[%s3609_s1 + $0xa08] sm:$0xff]  ;;  %837 = vmatpush.msrb.mxu0 %v296_v17  ;;  %v245_v17 = vld [vmem:[%s3609_s1 + $0x670] sm:$0xff] }
  0xf6   :  { %v424_v19 = vld [vmem:[%s3609_s1 + $0xc08] sm:$0xff]  ;;  %857 = vmatpush.msrb.mxu1 %v360_v18  ;;  %838 = vmatmul.f32.vlgmr.msrb.gmra.mxu0 %v2139_v26  ;;  %v45_v18 = vld [vmem:[%s3609_s1 + $0x30] sm:$0xff] }
  0xf7   :  { %v492_v20 = vld [vmem:[%s3609_s1 + $0xe28] sm:$0xff]  ;;  %877 = vmatpush.msrb.mxu2 %v424_v19  ;;  %902 = vmatpush.msra.mxu0 %v101_v22  ;;  %v109_v19 = vld [vmem:[%s3609_s1 + $0x230] sm:$0xff] }
  0xf8   :  { %896 = vmatpush.msrb.mxu3 %v492_v20  ;;  %v488_v25 = vld [vmem:[%s3609_s1 + $0xe08] sm:$0xff]  ;;  %922 = vmatpush.msra.mxu1 %v165_v23  ;;  %v173_v20 = vld [vmem:[%s3609_s1 + $0x430] sm:$0xff] }
  0xf9   :  { %942 = vmatpush.msra.mxu2 %v229_v24  ;;  %903 = vmatpush.msra.mxu0 %v97_v28  ;;  %v241_v22 = vld [vmem:[%s3609_s1 + $0x650] sm:$0xff] }
  0xfa   :  { %897 = vmatpush.msrb.mxu3 %v488_v25  ;;  %923 = vmatpush.msra.mxu1 %v161_v29  ;;  %v41_v23 = vld [vmem:[%s3609_s1 + $0x10] sm:$0xff] }
  0xfb   :  { %943 = vmatpush.msra.mxu2 %v225_v1  ;;  %904 = vmatpush.msra.mxu0 %v93_v3  ;;  %v105_v24 = vld [vmem:[%s3609_s1 + $0x210] sm:$0xff] }
  0xfc   :  { %962 = vmatpush.msra.mxu3 %v293_v2  ;;  %924 = vmatpush.msra.mxu1 %v157_v30  ;;  %v169_v25 = vld [vmem:[%s3609_s1 + $0x410] sm:$0xff] }
  0xfd   :  { %944 = vmatpush.msra.mxu2 %v221_v31  ;;  %905 = vmatpush.msra.mxu0 %v89_v34  ;;  %v237_v28 = vld [vmem:[%s3609_s1 + $0x630] sm:$0xff] }
  0xfe   :  { %963 = vmatpush.msra.mxu3 %v289_v33  ;;  %925 = vmatpush.msra.mxu1 %v153_v35  ;;  %v357_v29 = vld [vmem:[%s3609_s1 + $0x9f0] sm:$0xff] }
  0xff   :  { %945 = vmatpush.msra.mxu2 %v217_v36  ;;  %906 = vmatpush.msra.mxu0 %v85_v38  ;;  %v421_v1 = vld [vmem:[%s3609_s1 + $0xbf0] sm:$0xff] }
 0x100   :  { %964 = vmatpush.msra.mxu3 %v285_v37  ;;  %878 = vmatmul.f32.vlgmr.msrb.gmra.mxu2 %v2125_v21  ;;  %v485_v2 = vld [vmem:[%s3609_s1 + $0xdf0] sm:$0xff] }
 0x101   :  { %926 = vmatpush.msra.mxu1 %v149_v39  ;;  %946 = vmatpush.msra.mxu2 %v213_v40  ;;  %v233_v3 = vld [vmem:[%s3609_s1 + $0x610] sm:$0xff] }
 0x102   :  { %965 = vmatpush.msra.mxu3 %v281_v41  ;;  %907 = vmatpush.msra.mxu0 %v81_v42  ;;  %v353_v30 = vld [vmem:[%s3609_s1 + $0x9d0] sm:$0xff] }
 0x103   :  { %898 = vmatmul.f32.vlgmr.msrb.gmra.mxu3 %v2142_v27  ;;  %927 = vmatpush.msra.mxu1 %v145_v43  ;;  %v417_v31 = vld [vmem:[%s3609_s1 + $0xbd0] sm:$0xff] }
 0x104   :  { %947 = vmatpush.msra.mxu2 %v209_v44  ;;  %966 = vmatpush.msra.mxu3 %v277_v45  ;;  %v481_v33 = vld [vmem:[%s3609_s1 + $0xdd0] sm:$0xff] }
 0x105   :  { %858 = vmatmul.f32.vlgmr.msrb.gmra.mxu1 %v2157_v32  ;;  %908 = vmatpush.msra.mxu0 %v77_v46  ;;  %v549_v34 = vld [vmem:[%s3609_s1 + $0xff0] sm:$0xff] }
 0x106   :  { %928 = vmatpush.msra.mxu1 %v141_v47  ;;  %948 = vmatpush.msra.mxu2 %v205_v48  ;;  %v349_v35 = vld [vmem:[%s3609_s1 + $0x9b0] sm:$0xff] }
 0x107   :  { %967 = vmatpush.msra.mxu3 %v273_v49  ;;  %909 = vmatpush.msra.mxu0 %v73_v50  ;;  %v413_v36 = vld [vmem:[%s3609_s1 + $0xbb0] sm:$0xff] }
 0x108   :  { %929 = vmatpush.msra.mxu1 %v137_v51  ;;  %949 = vmatpush.msra.mxu2 %v201_v52  ;;  %v477_v37 = vld [vmem:[%s3609_s1 + $0xdb0] sm:$0xff] }
 0x109   :  { %968 = vmatpush.msra.mxu3 %v269_v53  ;;  %910 = vmatpush.msra.mxu0 %v69_v54  ;;  %v545_v38 = vld [vmem:[%s3609_s1 + $0xfd0] sm:$0xff] }
 0x10a   :  { %930 = vmatpush.msra.mxu1 %v133_v55  ;;  %950 = vmatpush.msra.mxu2 %v197_v56  ;;  %v345_v39 = vld [vmem:[%s3609_s1 + $0x990] sm:$0xff] }
 0x10b   :  { %969 = vmatpush.msra.mxu3 %v265_v57  ;;  %911 = vmatpush.msra.mxu0 %v65_v58  ;;  %v409_v40 = vld [vmem:[%s3609_s1 + $0xb90] sm:$0xff] }
 0x10c   :  { %931 = vmatpush.msra.mxu1 %v129_v59  ;;  %951 = vmatpush.msra.mxu2 %v193_v60  ;;  %v473_v41 = vld [vmem:[%s3609_s1 + $0xd90] sm:$0xff] }
 0x10d   :  { %970 = vmatpush.msra.mxu3 %v261_v61  ;;  %912 = vmatpush.msra.mxu0 %v61_v62  ;;  %v541_v42 = vld [vmem:[%s3609_s1 + $0xfb0] sm:$0xff] }
 0x10e   :  { %932 = vmatpush.msra.mxu1 %v125_v63  ;;  %952 = vmatpush.msra.mxu2 %v189_v0  ;;  %v341_v43 = vld [vmem:[%s3609_s1 + $0x970] sm:$0xff] }
 0x10f   :  { %971 = vmatpush.msra.mxu3 %v257_v4  ;;  %913 = vmatpush.msra.mxu0 %v57_v5  ;;  %v405_v44 = vld [vmem:[%s3609_s1 + $0xb70] sm:$0xff] }
 0x110   :  { %933 = vmatpush.msra.mxu1 %v121_v6  ;;  %953 = vmatpush.msra.mxu2 %v185_v7  ;;  %v469_v45 = vld [vmem:[%s3609_s1 + $0xd70] sm:$0xff] }
 0x111   :  { %972 = vmatpush.msra.mxu3 %v253_v8  ;;  %914 = vmatpush.msra.mxu0 %v53_v10  ;;  %v537_v46 = vld [vmem:[%s3609_s1 + $0xf90] sm:$0xff] }
 0x112   :  { %934 = vmatpush.msra.mxu1 %v117_v11  ;;  %954 = vmatpush.msra.mxu2 %v181_v12  ;;  %v337_v47 = vld [vmem:[%s3609_s1 + $0x950] sm:$0xff] }
 0x113   :  { %973 = vmatpush.msra.mxu3 %v249_v13  ;;  %915 = vmatpush.msra.mxu0 %v49_v14  ;;  %v401_v48 = vld [vmem:[%s3609_s1 + $0xb50] sm:$0xff] }
 0x114   :  { %935 = vmatpush.msra.mxu1 %v113_v15  ;;  %955 = vmatpush.msra.mxu2 %v177_v16  ;;  %v465_v49 = vld [vmem:[%s3609_s1 + $0xd50] sm:$0xff] }
 0x115   :  { %974 = vmatpush.msra.mxu3 %v245_v17  ;;  %916 = vmatpush.msra.mxu0 %v45_v18  ;;  %v533_v50 = vld [vmem:[%s3609_s1 + $0xf70] sm:$0xff] }
 0x116   :  { %936 = vmatpush.msra.mxu1 %v109_v19  ;;  %956 = vmatpush.msra.mxu2 %v173_v20  ;;  %v333_v51 = vld [vmem:[%s3609_s1 + $0x930] sm:$0xff] }
 0x117   :  { %975 = vmatpush.msra.mxu3 %v241_v22  ;;  %917 = vmatpush.msra.mxu0 %v41_v23  ;;  %v397_v52 = vld [vmem:[%s3609_s1 + $0xb30] sm:$0xff] }
 0x118   :  { %937 = vmatpush.msra.mxu1 %v105_v24  ;;  %957 = vmatpush.msra.mxu2 %v169_v25  ;;  %v461_v53 = vld [vmem:[%s3609_s1 + $0xd30] sm:$0xff]  ;;  %v2841_v24 = vld.sshfl [vmem:[#allocation1] sm:$0xff pattern:$0x73625140] }
 0x119   :  { %976 = vmatpush.msra.mxu3 %v237_v28  ;;  %982 = vmatpush.msrb.mxu0 %v357_v29  ;;  %v529_v54 = vld [vmem:[%s3609_s1 + $0xf50] sm:$0xff] }
 0x11a   :  { %1002 = vmatpush.msrb.mxu1 %v421_v1  ;;  %1022 = vmatpush.msrb.mxu2 %v485_v2  ;;  %v329_v55 = vld [vmem:[%s3609_s1 + $0x910] sm:$0xff] }
 0x11b   :  { %977 = vmatpush.msra.mxu3 %v233_v3  ;;  %983 = vmatpush.msrb.mxu0 %v353_v30  ;;  %v393_v56 = vld [vmem:[%s3609_s1 + $0xb10] sm:$0xff] }
 0x11c   :  { %1003 = vmatpush.msrb.mxu1 %v417_v31  ;;  %1023 = vmatpush.msrb.mxu2 %v481_v33  ;;  %v457_v57 = vld [vmem:[%s3609_s1 + $0xd10] sm:$0xff] }
 0x11d   :  { %1042 = vmatpush.msrb.mxu3 %v549_v34  ;;  %984 = vmatpush.msrb.mxu0 %v349_v35  ;;  %v525_v58 = vld [vmem:[%s3609_s1 + $0xf30] sm:$0xff]  ;;  %v102_v34 = vld [vmem:[%s3609_s1 + $0x1f8] sm:$0xff] }
 0x11e   :  { %1004 = vmatpush.msrb.mxu1 %v413_v36  ;;  %1024 = vmatpush.msrb.mxu2 %v477_v37  ;;  %v325_v59 = vld [vmem:[%s3609_s1 + $0x8f0] sm:$0xff]  ;;  %v166_v35 = vld [vmem:[%s3609_s1 + $0x3f8] sm:$0xff] }
 0x11f   :  { %1043 = vmatpush.msrb.mxu3 %v545_v38  ;;  %985 = vmatpush.msrb.mxu0 %v345_v39  ;;  %v389_v60 = vld [vmem:[%s3609_s1 + $0xaf0] sm:$0xff]  ;;  %v230_v36 = vld [vmem:[%s3609_s1 + $0x5f8] sm:$0xff] }
 0x120   :  { %1005 = vmatpush.msrb.mxu1 %v409_v40  ;;  %1025 = vmatpush.msrb.mxu2 %v473_v41  ;;  %v453_v61 = vld [vmem:[%s3609_s1 + $0xcf0] sm:$0xff]  ;;  %v98_v38 = vld [vmem:[%s3609_s1 + $0x1d8] sm:$0xff] }
 0x121   :  { %1044 = vmatpush.msrb.mxu3 %v541_v42  ;;  %986 = vmatpush.msrb.mxu0 %v341_v43  ;;  %v521_v62 = vld [vmem:[%s3609_s1 + $0xf10] sm:$0xff]  ;;  %v162_v39 = vld [vmem:[%s3609_s1 + $0x3d8] sm:$0xff] }
 0x122   :  { %1006 = vmatpush.msrb.mxu1 %v405_v44  ;;  %1026 = vmatpush.msrb.mxu2 %v469_v45  ;;  %v321_v63 = vld [vmem:[%s3609_s1 + $0x8d0] sm:$0xff]  ;;  %v226_v40 = vld [vmem:[%s3609_s1 + $0x5d8] sm:$0xff] }
 0x123   :  { %1045 = vmatpush.msrb.mxu3 %v537_v46  ;;  %987 = vmatpush.msrb.mxu0 %v337_v47  ;;  %v385_v0 = vld [vmem:[%s3609_s1 + $0xad0] sm:$0xff]  ;;  %v94_v41 = vld [vmem:[%s3609_s1 + $0x1b8] sm:$0xff] }
 0x124   :  { %1007 = vmatpush.msrb.mxu1 %v401_v48  ;;  %1027 = vmatpush.msrb.mxu2 %v465_v49  ;;  %v449_v4 = vld [vmem:[%s3609_s1 + $0xcd0] sm:$0xff]  ;;  %v158_v42 = vld [vmem:[%s3609_s1 + $0x3b8] sm:$0xff] }
 0x125   :  { %1046 = vmatpush.msrb.mxu3 %v533_v50  ;;  %988 = vmatpush.msrb.mxu0 %v333_v51  ;;  %v517_v5 = vld [vmem:[%s3609_s1 + $0xef0] sm:$0xff]  ;;  %v290_v43 = vld [vmem:[%s3609_s1 + $0x7d8] sm:$0xff] }
 0x126   :  { %1008 = vmatpush.msrb.mxu1 %v397_v52  ;;  %1028 = vmatpush.msrb.mxu2 %v461_v53  ;;  %v317_v6 = vld [vmem:[%s3609_s1 + $0x8b0] sm:$0xff]  ;;  %v154_v44 = vld [vmem:[%s3609_s1 + $0x398] sm:$0xff] }
 0x127   :  { %1047 = vmatpush.msrb.mxu3 %v529_v54  ;;  %989 = vmatpush.msrb.mxu0 %v329_v55  ;;  %v381_v7 = vld [vmem:[%s3609_s1 + $0xab0] sm:$0xff]  ;;  %v218_v45 = vld [vmem:[%s3609_s1 + $0x598] sm:$0xff] }
 0x128   :  { %1009 = vmatpush.msrb.mxu1 %v393_v56  ;;  %1029 = vmatpush.msrb.mxu2 %v457_v57  ;;  %v445_v8 = vld [vmem:[%s3609_s1 + $0xcb0] sm:$0xff]  ;;  %v286_v46 = vld [vmem:[%s3609_s1 + $0x7b8] sm:$0xff] }
 0x129   :  { %1048 = vmatpush.msrb.mxu3 %v525_v58  ;;  %990 = vmatpush.msrb.mxu0 %v325_v59  ;;  %v513_v10 = vld [vmem:[%s3609_s1 + $0xed0] sm:$0xff]  ;;  %v150_v47 = vld [vmem:[%s3609_s1 + $0x378] sm:$0xff] }
 0x12a   :  { %1010 = vmatpush.msrb.mxu1 %v389_v60  ;;  %1030 = vmatpush.msrb.mxu2 %v453_v61  ;;  %v313_v11 = vld [vmem:[%s3609_s1 + $0x890] sm:$0xff]  ;;  %v214_v48 = vld [vmem:[%s3609_s1 + $0x578] sm:$0xff] }
 0x12b   :  { %1049 = vmatpush.msrb.mxu3 %v521_v62  ;;  %991 = vmatpush.msrb.mxu0 %v321_v63  ;;  %v377_v12 = vld [vmem:[%s3609_s1 + $0xa90] sm:$0xff]  ;;  %v282_v49 = vld [vmem:[%s3609_s1 + $0x798] sm:$0xff] }
 0x12c   :  { %1011 = vmatpush.msrb.mxu1 %v385_v0  ;;  %1031 = vmatpush.msrb.mxu2 %v449_v4  ;;  %v441_v13 = vld [vmem:[%s3609_s1 + $0xc90] sm:$0xff]  ;;  %v82_v50 = vld [vmem:[%s3609_s1 + $0x158] sm:$0xff] }
 0x12d   :  { %1050 = vmatpush.msrb.mxu3 %v517_v5  ;;  %992 = vmatpush.msrb.mxu0 %v317_v6  ;;  %v509_v14 = vld [vmem:[%s3609_s1 + $0xeb0] sm:$0xff]  ;;  %v146_v51 = vld [vmem:[%s3609_s1 + $0x358] sm:$0xff] }
 0x12e   :  { %1012 = vmatpush.msrb.mxu1 %v381_v7  ;;  %1032 = vmatpush.msrb.mxu2 %v445_v8  ;;  %v309_v15 = vld [vmem:[%s3609_s1 + $0x870] sm:$0xff]  ;;  %v210_v52 = vld [vmem:[%s3609_s1 + $0x558] sm:$0xff] }
 0x12f   :  { %1051 = vmatpush.msrb.mxu3 %v513_v10  ;;  %993 = vmatpush.msrb.mxu0 %v313_v11  ;;  %v373_v16 = vld [vmem:[%s3609_s1 + $0xa70] sm:$0xff]  ;;  %v278_v53 = vld [vmem:[%s3609_s1 + $0x778] sm:$0xff] }
 0x130   :  { %1013 = vmatpush.msrb.mxu1 %v377_v12  ;;  %v437_v17 = vld [vmem:[%s3609_s1 + $0xc70] sm:$0xff]  ;;  %1033 = vmatpush.msrb.mxu2 %v441_v13  ;;  %v78_v54 = vld [vmem:[%s3609_s1 + $0x138] sm:$0xff] }
 0x131   :  { %1052 = vmatpush.msrb.mxu3 %v509_v14  ;;  %v505_v18 = vld [vmem:[%s3609_s1 + $0xe90] sm:$0xff]  ;;  %994 = vmatpush.msrb.mxu0 %v309_v15  ;;  %v142_v55 = vld [vmem:[%s3609_s1 + $0x338] sm:$0xff] }
 0x132   :  { %v2829_v19 = vld.sshfl [vmem:[#allocation1 + $0x10] sm:$0xff pattern:$0x73625140]  ;;  %1014 = vmatpush.msrb.mxu1 %v373_v16  ;;  %1034 = vmatpush.msrb.mxu2 %v437_v17  ;;  %v206_v56 = vld [vmem:[%s3609_s1 + $0x538] sm:$0xff] }
 0x133   :  { %958 = vmatmul.f32.vlgmr.msra.gmra.mxu2 %v2829_v19  ;;  %v305_v20 = vld [vmem:[%s3609_s1 + $0x850] sm:$0xff]  ;;  %1053 = vmatpush.msrb.mxu3 %v505_v18  ;;  %v274_v57 = vld [vmem:[%s3609_s1 + $0x758] sm:$0xff] }
 0x134   :  { %v369_v22 = vld [vmem:[%s3609_s1 + $0xa50] sm:$0xff]  ;;  %918 = vmatmul.f32.vlgmr.msra.gmra.mxu0 %v2841_v24  ;;  %978 = vmatmul.f32.vlgmr.msra.gmra.mxu3 %v2089_v9  ;;  %v2860_v9 = vld.sshfl [vmem:[#allocation1 + $0x8] sm:$0xff pattern:$0x73625140]  ;;  %v74_v58 = vld [vmem:[%s3609_s1 + $0x118] sm:$0xff] }
 0x135   :  { %v433_v23 = vld [vmem:[%s3609_s1 + $0xc50] sm:$0xff]  ;;  %995 = vmatpush.msrb.mxu0 %v305_v20  ;;  %1015 = vmatpush.msrb.mxu1 %v369_v22  ;;  %v138_v59 = vld [vmem:[%s3609_s1 + $0x318] sm:$0xff] }
 0x136   :  { %v501_v25 = vld [vmem:[%s3609_s1 + $0xe70] sm:$0xff]  ;;  %1035 = vmatpush.msrb.mxu2 %v433_v23  ;;  %938 = vmatmul.f32.vlgmr.msra.gmra.mxu1 %v2860_v9  ;;  %v202_v60 = vld [vmem:[%s3609_s1 + $0x518] sm:$0xff] }
 0x137   :  { %v301_v28 = vld [vmem:[%s3609_s1 + $0x830] sm:$0xff]  ;;  %1054 = vmatpush.msrb.mxu3 %v501_v25  ;;  %v270_v61 = vld [vmem:[%s3609_s1 + $0x738] sm:$0xff] }
 0x138   :  { %v365_v29 = vld [vmem:[%s3609_s1 + $0xa30] sm:$0xff]  ;;  %996 = vmatpush.msrb.mxu0 %v301_v28  ;;  %v70_v62 = vld [vmem:[%s3609_s1 + $0xf8] sm:$0xff] }
 0x139   :  { %v429_v1 = vld [vmem:[%s3609_s1 + $0xc30] sm:$0xff]  ;;  %1016 = vmatpush.msrb.mxu1 %v365_v29  ;;  %v134_v63 = vld [vmem:[%s3609_s1 + $0x2f8] sm:$0xff] }
 0x13a   :  { %v497_v2 = vld [vmem:[%s3609_s1 + $0xe50] sm:$0xff]  ;;  %1036 = vmatpush.msrb.mxu2 %v429_v1  ;;  %v198_v0 = vld [vmem:[%s3609_s1 + $0x4f8] sm:$0xff] }
 0x13b   :  { %v297_v3 = vld [vmem:[%s3609_s1 + $0x810] sm:$0xff]  ;;  %1055 = vmatpush.msrb.mxu3 %v497_v2  ;;  %v266_v4 = vld [vmem:[%s3609_s1 + $0x718] sm:$0xff] }
 0x13c   :  { %v361_v30 = vld [vmem:[%s3609_s1 + $0xa10] sm:$0xff]  ;;  %997 = vmatpush.msrb.mxu0 %v297_v3  ;;  %v66_v5 = vld [vmem:[%s3609_s1 + $0xd8] sm:$0xff] }
 0x13d   :  { %v425_v31 = vld [vmem:[%s3609_s1 + $0xc10] sm:$0xff]  ;;  %1017 = vmatpush.msrb.mxu1 %v361_v30  ;;  %998 = vmatmul.f32.vlgmr.msrb.gmra.mxu0 %v2139_v26  ;;  %v222_v26 = vld [vmem:[%s3609_s1 + $0x5b8] sm:$0xff] }
 0x13e   :  { %v493_v33 = vld [vmem:[%s3609_s1 + $0xe30] sm:$0xff]  ;;  %1037 = vmatpush.msrb.mxu2 %v425_v31  ;;  %1062 = vmatpush.msra.mxu0 %v102_v34  ;;  %v130_v6 = vld [vmem:[%s3609_s1 + $0x2d8] sm:$0xff] }
 0x13f   :  { %1056 = vmatpush.msrb.mxu3 %v493_v33  ;;  %v489_v37 = vld [vmem:[%s3609_s1 + $0xe10] sm:$0xff]  ;;  %1038 = vmatmul.f32.vlgmr.msrb.gmra.mxu2 %v2125_v21  ;;  %v294_v21 = vld [vmem:[%s3609_s1 + $0x7f8] sm:$0xff] }
 0x140   :  { %1082 = vmatpush.msra.mxu1 %v166_v35  ;;  %1102 = vmatpush.msra.mxu2 %v230_v36  ;;  %v194_v7 = vld [vmem:[%s3609_s1 + $0x4d8] sm:$0xff] }
 0x141   :  { %1057 = vmatpush.msrb.mxu3 %v489_v37  ;;  %1063 = vmatpush.msra.mxu0 %v98_v38  ;;  %v262_v8 = vld [vmem:[%s3609_s1 + $0x6f8] sm:$0xff] }
 0x142   :  { %1058 = vmatmul.f32.vlgmr.msrb.gmra.mxu3 %v2142_v27  ;;  %1083 = vmatpush.msra.mxu1 %v162_v39  ;;  %v90_v27 = vld [vmem:[%s3609_s1 + $0x198] sm:$0xff] }
 0x143   :  { %1103 = vmatpush.msra.mxu2 %v226_v40  ;;  %1122 = vmatpush.msra.mxu3 %v294_v21  ;;  %v62_v10 = vld [vmem:[%s3609_s1 + $0xb8] sm:$0xff] }
 0x144   :  { %1018 = vmatmul.f32.vlgmr.msrb.gmra.mxu1 %v2157_v32  ;;  %1064 = vmatpush.msra.mxu0 %v94_v41  ;;  %v86_v32 = vld [vmem:[%s3609_s1 + $0x178] sm:$0xff] }
 0x145   :  { %1084 = vmatpush.msra.mxu1 %v158_v42  ;;  %1104 = vmatpush.msra.mxu2 %v222_v26  ;;  %v126_v11 = vld [vmem:[%s3609_s1 + $0x2b8] sm:$0xff] }
 0x146   :  { %1123 = vmatpush.msra.mxu3 %v290_v43  ;;  %1065 = vmatpush.msra.mxu0 %v90_v27  ;;  %v190_v12 = vld [vmem:[%s3609_s1 + $0x4b8] sm:$0xff] }
 0x147   :  { %1085 = vmatpush.msra.mxu1 %v154_v44  ;;  %1105 = vmatpush.msra.mxu2 %v218_v45  ;;  %v258_v13 = vld [vmem:[%s3609_s1 + $0x6d8] sm:$0xff] }
 0x148   :  { %1124 = vmatpush.msra.mxu3 %v286_v46  ;;  %1066 = vmatpush.msra.mxu0 %v86_v32  ;;  %v58_v14 = vld [vmem:[%s3609_s1 + $0x98] sm:$0xff] }
 0x149   :  { %1086 = vmatpush.msra.mxu1 %v150_v47  ;;  %1106 = vmatpush.msra.mxu2 %v214_v48  ;;  %v122_v15 = vld [vmem:[%s3609_s1 + $0x298] sm:$0xff] }
 0x14a   :  { %1125 = vmatpush.msra.mxu3 %v282_v49  ;;  %1067 = vmatpush.msra.mxu0 %v82_v50  ;;  %v186_v16 = vld [vmem:[%s3609_s1 + $0x498] sm:$0xff] }
 0x14b   :  { %1087 = vmatpush.msra.mxu1 %v146_v51  ;;  %1107 = vmatpush.msra.mxu2 %v210_v52  ;;  %v254_v17 = vld [vmem:[%s3609_s1 + $0x6b8] sm:$0xff] }
 0x14c   :  { %1126 = vmatpush.msra.mxu3 %v278_v53  ;;  %1068 = vmatpush.msra.mxu0 %v78_v54  ;;  %v54_v18 = vld [vmem:[%s3609_s1 + $0x78] sm:$0xff] }
 0x14d   :  { %1088 = vmatpush.msra.mxu1 %v142_v55  ;;  %1108 = vmatpush.msra.mxu2 %v206_v56  ;;  %v118_v20 = vld [vmem:[%s3609_s1 + $0x278] sm:$0xff] }
 0x14e   :  { %1127 = vmatpush.msra.mxu3 %v274_v57  ;;  %1069 = vmatpush.msra.mxu0 %v74_v58  ;;  %v182_v22 = vld [vmem:[%s3609_s1 + $0x478] sm:$0xff] }
 0x14f   :  { %1089 = vmatpush.msra.mxu1 %v138_v59  ;;  %1109 = vmatpush.msra.mxu2 %v202_v60  ;;  %v250_v23 = vld [vmem:[%s3609_s1 + $0x698] sm:$0xff] }
 0x150   :  { %1128 = vmatpush.msra.mxu3 %v270_v61  ;;  %1070 = vmatpush.msra.mxu0 %v70_v62  ;;  %v50_v25 = vld [vmem:[%s3609_s1 + $0x58] sm:$0xff] }
 0x151   :  { %1090 = vmatpush.msra.mxu1 %v134_v63  ;;  %1110 = vmatpush.msra.mxu2 %v198_v0  ;;  %v114_v28 = vld [vmem:[%s3609_s1 + $0x258] sm:$0xff] }
 0x152   :  { %1129 = vmatpush.msra.mxu3 %v266_v4  ;;  %1071 = vmatpush.msra.mxu0 %v66_v5  ;;  %v178_v29 = vld [vmem:[%s3609_s1 + $0x458] sm:$0xff] }
 0x153   :  { %1091 = vmatpush.msra.mxu1 %v130_v6  ;;  %1111 = vmatpush.msra.mxu2 %v194_v7  ;;  %v246_v1 = vld [vmem:[%s3609_s1 + $0x678] sm:$0xff] }
 0x154   :  { %1130 = vmatpush.msra.mxu3 %v262_v8  ;;  %1072 = vmatpush.msra.mxu0 %v62_v10  ;;  %v46_v2 = vld [vmem:[%s3609_s1 + $0x38] sm:$0xff]  ;;  %v3179_v8 = vpop.f32.mrf.mxu0 }
 0x155   :  { %1092 = vmatpush.msra.mxu1 %v126_v11  ;;  %1112 = vmatpush.msra.mxu2 %v190_v12  ;;  %v110_v3 = vld [vmem:[%s3609_s1 + $0x238] sm:$0xff] }
 0x156   :  { %1131 = vmatpush.msra.mxu3 %v258_v13  ;;  %1073 = vmatpush.msra.mxu0 %v58_v14  ;;  %v174_v30 = vld [vmem:[%s3609_s1 + $0x438] sm:$0xff] }
 0x157   :  { %1093 = vmatpush.msra.mxu1 %v122_v15  ;;  %1113 = vmatpush.msra.mxu2 %v186_v16  ;;  %v242_v31 = vld [vmem:[%s3609_s1 + $0x658] sm:$0xff] }
 0x158   :  { %1132 = vmatpush.msra.mxu3 %v254_v17  ;;  %1074 = vmatpush.msra.mxu0 %v54_v18  ;;  %v42_v33 = vld [vmem:[%s3609_s1 + $0x18] sm:$0xff]  ;;  %v3205_v18 = vpop.f32.mrf.mxu1 }
 0x159   :  { %1094 = vmatpush.msra.mxu1 %v118_v20  ;;  %1114 = vmatpush.msra.mxu2 %v182_v22  ;;  %v106_v34 = vld [vmem:[%s3609_s1 + $0x218] sm:$0xff] }
 0x15a   :  { %1133 = vmatpush.msra.mxu3 %v250_v23  ;;  %1075 = vmatpush.msra.mxu0 %v50_v25  ;;  %v170_v35 = vld [vmem:[%s3609_s1 + $0x418] sm:$0xff] }
 0x15b   :  { %1095 = vmatpush.msra.mxu1 %v114_v28  ;;  %1115 = vmatpush.msra.mxu2 %v178_v29  ;;  %v238_v36 = vld [vmem:[%s3609_s1 + $0x638] sm:$0xff] }
 0x15c   :  { %1134 = vmatpush.msra.mxu3 %v246_v1  ;;  %1076 = vmatpush.msra.mxu0 %v46_v2  ;;  %v358_v37 = vld [vmem:[%s3609_s1 + $0x9f8] sm:$0xff]  ;;  %v3228_v2 = vpop.f32.mrf.mxu2 }
 0x15d   :  { %1096 = vmatpush.msra.mxu1 %v110_v3  ;;  %1116 = vmatpush.msra.mxu2 %v174_v30  ;;  %v422_v38 = vld [vmem:[%s3609_s1 + $0xbf8] sm:$0xff] }
 0x15e   :  { %1135 = vmatpush.msra.mxu3 %v242_v31  ;;  %1077 = vmatpush.msra.mxu0 %v42_v33  ;;  %v486_v39 = vld [vmem:[%s3609_s1 + $0xdf8] sm:$0xff]  ;;  %v3237_v31 = vpop.f32.mrf.mxu0 }
 0x15f   :  { %1097 = vmatpush.msra.mxu1 %v106_v34  ;;  %v234_v40 = vld [vmem:[%s3609_s1 + $0x618] sm:$0xff]  ;;  %1117 = vmatpush.msra.mxu2 %v170_v35  ;;  %v3249_v35 = vpop.f32.mrf.mxu3 }
 0x160   :  { %1136 = vmatpush.msra.mxu3 %v238_v36  ;;  %v354_v21 = vld [vmem:[%s3609_s1 + $0x9d8] sm:$0xff]  ;;  %1142 = vmatpush.msrb.mxu0 %v358_v37 }
 0x161   :  { %v418_v41 = vld [vmem:[%s3609_s1 + $0xbd8] sm:$0xff]  ;;  %1162 = vmatpush.msrb.mxu1 %v422_v38  ;;  %1182 = vmatpush.msrb.mxu2 %v486_v39 }
 0x162   :  { %v482_v42 = vld [vmem:[%s3609_s1 + $0xdd8] sm:$0xff]  ;;  %1137 = vmatpush.msra.mxu3 %v234_v40  ;;  %1143 = vmatpush.msrb.mxu0 %v354_v21  ;;  %v3266_v40 = vld [vmem:[%s3610_s2] sm:$0xf]  ;;  %v3268_v21 = vpop.f32.mrf.mxu1 }
 0x163   :  { %v550_v26 = vld [vmem:[%s3609_s1 + $0xff8] sm:$0xff]  ;;  %1163 = vmatpush.msrb.mxu1 %v418_v41  ;;  %1183 = vmatpush.msrb.mxu2 %v482_v42 }
 0x164   :  { %v350_v43 = vld [vmem:[%s3609_s1 + $0x9b8] sm:$0xff]  ;;  %1202 = vmatpush.msrb.mxu3 %v550_v26  ;;  %1118 = vmatmul.f32.vlgmr.msra.gmra.mxu2 %v2829_v19 }
 0x165   :  { %v414_v27 = vld [vmem:[%s3609_s1 + $0xbb8] sm:$0xff]  ;;  %1144 = vmatpush.msrb.mxu0 %v350_v43  ;;  %1098 = vmatmul.f32.vlgmr.msra.gmra.mxu1 %v2860_v9 }
 0x166   :  { %v478_v44 = vld [vmem:[%s3609_s1 + $0xdb8] sm:$0xff]  ;;  %1164 = vmatpush.msrb.mxu1 %v414_v27  ;;  %1078 = vmatmul.f32.vlgmr.msra.gmra.mxu0 %v2841_v24  ;;  %v553_v27 = vperm.slane %v3266_v40, 0 }
 0x167   :  { %v546_v45 = vld [vmem:[%s3609_s1 + $0xfd8] sm:$0xff]  ;;  %1184 = vmatpush.msrb.mxu2 %v478_v44 }
 0x168   :  { %v346_v46 = vld [vmem:[%s3609_s1 + $0x998] sm:$0xff]  ;;  %1203 = vmatpush.msrb.mxu3 %v546_v45 }
 0x169   :  { %v410_v32 = vld [vmem:[%s3609_s1 + $0xb98] sm:$0xff]  ;;  %1145 = vmatpush.msrb.mxu0 %v346_v46  ;;  %v554_v46 = vperm.slane %v3266_v40, 1 }
 0x16a   :  { %v474_v47 = vld [vmem:[%s3609_s1 + $0xd98] sm:$0xff]  ;;  %1165 = vmatpush.msrb.mxu1 %v410_v32  ;;  %v3294_v32 = vpop.f32.mrf.mxu2 }
 0x16b   :  { %v542_v48 = vld [vmem:[%s3609_s1 + $0xfb8] sm:$0xff]  ;;  %1185 = vmatpush.msrb.mxu2 %v474_v47  ;;  %v759_v47 = vpop.f32.mrf.mxu0 }
 0x16c   :  { %v342_v49 = vld [vmem:[%s3609_s1 + $0x978] sm:$0xff]  ;;  %1204 = vmatpush.msrb.mxu3 %v542_v48  ;;  %v1535_v48 = vld.sshfl [vmem:[#allocation1 + $0x30] sm:$0xff pattern:$0x73625140] }
 0x16d   :  { %v406_v50 = vld [vmem:[%s3609_s1 + $0xb78] sm:$0xff]  ;;  %1146 = vmatpush.msrb.mxu0 %v342_v49  ;;  %v1236_v49 = vld [vmem:[%s3611_s3 + $0x70] sm:$0xff] }
 0x16e   :  { %v470_v51 = vld [vmem:[%s3609_s1 + $0xd78] sm:$0xff]  ;;  %1166 = vmatpush.msrb.mxu1 %v406_v50  ;;  %v1252_v50 = vld [vmem:[%s3611_s3 + $0xf0] sm:$0xff] }
 0x16f   :  { %v538_v52 = vld [vmem:[%s3609_s1 + $0xf98] sm:$0xff]  ;;  %1186 = vmatpush.msrb.mxu2 %v470_v51 }
 0x170   :  { %v338_v53 = vld [vmem:[%s3609_s1 + $0x958] sm:$0xff]  ;;  %1205 = vmatpush.msrb.mxu3 %v538_v52  ;;  %v600_v52 = vadd.f32 %v3179_v8, %v553_v27  ;;  %v1260_v27 = vld [vmem:[%s3611_s3 + $0x130] sm:$0xff] }
 0x171   :  { %v402_v54 = vld [vmem:[%s3609_s1 + $0xb58] sm:$0xff]  ;;  %1147 = vmatpush.msrb.mxu0 %v338_v53  ;;  %v1536_v53 = vld.sshfl [vmem:[#allocation1 + $0x20] sm:$0xff pattern:$0x73625140] }
 0x172   :  { %v466_v55 = vld [vmem:[%s3609_s1 + $0xd58] sm:$0xff]  ;;  %1167 = vmatpush.msrb.mxu1 %v402_v54  ;;  %v799_v8 = vpop.f32.mrf.mxu2 }
 0x173   :  { %v534_v56 = vld [vmem:[%s3609_s1 + $0xf78] sm:$0xff]  ;;  %1187 = vmatpush.msrb.mxu2 %v466_v55  ;;  %v760_v55 = vadd.f32 %v759_v47, %v554_v46 }
 0x174   :  { %v334_v57 = vld [vmem:[%s3609_s1 + $0x938] sm:$0xff]  ;;  %1206 = vmatpush.msrb.mxu3 %v534_v56  ;;  %v1235_v56 = vld [vmem:[%s3611_s3 + $0x68] sm:$0xff] }
 0x175   :  { %v398_v58 = vld [vmem:[%s3609_s1 + $0xb38] sm:$0xff]  ;;  %1148 = vmatpush.msrb.mxu0 %v334_v57  ;;  %v1251_v57 = vld [vmem:[%s3611_s3 + $0xe8] sm:$0xff] }
 0x176   :  { %v462_v59 = vld [vmem:[%s3609_s1 + $0xd38] sm:$0xff]  ;;  %1168 = vmatpush.msrb.mxu1 %v398_v58  ;;  %v3312_v58 = vpop.f32.mrf.mxu3 }
 0x177   :  { %v530_v60 = vld [vmem:[%s3609_s1 + $0xf58] sm:$0xff]  ;;  %1188 = vmatpush.msrb.mxu2 %v462_v59  ;;  %v779_v59 = vpop.f32.mrf.mxu1 }
 0x178   :  { %v330_v61 = vld [vmem:[%s3609_s1 + $0x918] sm:$0xff]  ;;  %1207 = vmatpush.msrb.mxu3 %v530_v60  ;;  %v1268_v60 = vld [vmem:[%s3611_s3 + $0x170] sm:$0xff] }
 0x179   :  { %v394_v62 = vld [vmem:[%s3609_s1 + $0xb18] sm:$0xff]  ;;  %1149 = vmatpush.msrb.mxu0 %v330_v61  ;;  %v1538_v61 = vld.sshfl [vmem:[#allocation1 + $0x28] sm:$0xff pattern:$0x73625140] }
 0x17a   :  { %v458_v63 = vld [vmem:[%s3609_s1 + $0xd18] sm:$0xff]  ;;  %1169 = vmatpush.msrb.mxu1 %v394_v62  ;;  %v1234_v62 = vld [vmem:[%s3611_s3 + $0x60] sm:$0xff] }
 0x17b   :  { %v526_v0 = vld [vmem:[%s3609_s1 + $0xf38] sm:$0xff]  ;;  %1189 = vmatpush.msrb.mxu2 %v458_v63  ;;  %v1250_v63 = vld [vmem:[%s3611_s3 + $0xe0] sm:$0xff] }
 0x17c   :  { %v326_v4 = vld [vmem:[%s3609_s1 + $0x8f8] sm:$0xff]  ;;  %1208 = vmatpush.msrb.mxu3 %v526_v0  ;;  %v1267_v0 = vld [vmem:[%s3611_s3 + $0x168] sm:$0xff] }
 0x17d   :  { %v390_v5 = vld [vmem:[%s3609_s1 + $0xaf8] sm:$0xff]  ;;  %1150 = vmatpush.msrb.mxu0 %v326_v4  ;;  %v620_v4 = vadd.f32 %v3205_v18, %v600_v52  ;;  %v1258_v52 = vld [vmem:[%s3611_s3 + $0x120] sm:$0xff] }
 0x17e   :  { %v454_v6 = vld [vmem:[%s3609_s1 + $0xcf8] sm:$0xff]  ;;  %1170 = vmatpush.msrb.mxu1 %v390_v5  ;;  %v780_v5 = vadd.f32 %v779_v59, %v760_v55  ;;  %v819_v18 = vpop.f32.mrf.mxu3 }
 0x17f   :  { %v522_v7 = vld [vmem:[%s3609_s1 + $0xf18] sm:$0xff]  ;;  %1190 = vmatpush.msrb.mxu2 %v454_v6 }
 0x180   :  { %v322_v10 = vld [vmem:[%s3609_s1 + $0x8d8] sm:$0xff]  ;;  %1209 = vmatpush.msrb.mxu3 %v522_v7 }
 0x181   :  { %v386_v11 = vld [vmem:[%s3609_s1 + $0xad8] sm:$0xff]  ;;  %1151 = vmatpush.msrb.mxu0 %v322_v10  ;;  %v1266_v10 = vld [vmem:[%s3611_s3 + $0x160] sm:$0xff] }
 0x182   :  { %v450_v12 = vld [vmem:[%s3609_s1 + $0xcd8] sm:$0xff]  ;;  %1171 = vmatpush.msrb.mxu1 %v386_v11  ;;  %v1232_v11 = vld [vmem:[%s3611_s3 + $0x50] sm:$0xff] }
 0x183   :  { %v518_v13 = vld [vmem:[%s3609_s1 + $0xef8] sm:$0xff]  ;;  %1191 = vmatpush.msrb.mxu2 %v450_v12  ;;  %v1248_v12 = vld [vmem:[%s3611_s3 + $0xd0] sm:$0xff] }
 0x184   :  { %v318_v14 = vld [vmem:[%s3609_s1 + $0x8b8] sm:$0xff]  ;;  %1210 = vmatpush.msrb.mxu3 %v518_v13 }
 0x185   :  { %v382_v15 = vld [vmem:[%s3609_s1 + $0xab8] sm:$0xff]  ;;  %1152 = vmatpush.msrb.mxu0 %v318_v14  ;;  %v640_v14 = vadd.f32 %v3228_v2, %v620_v4  ;;  %v555_v4 = vperm.slane %v3266_v40, 2 }
 0x186   :  { %v446_v16 = vld [vmem:[%s3609_s1 + $0xcb8] sm:$0xff]  ;;  %1172 = vmatpush.msrb.mxu1 %v382_v15  ;;  %v800_v15 = vadd.f32 %v799_v8, %v780_v5  ;;  %v1279_v5 = vld [vmem:[%s3611_s3 + $0x1c8] sm:$0xff] }
 0x187   :  { %v514_v17 = vld [vmem:[%s3609_s1 + $0xed8] sm:$0xff]  ;;  %1192 = vmatpush.msrb.mxu2 %v446_v16  ;;  %v1231_v16 = vld [vmem:[%s3611_s3 + $0x48] sm:$0xff] }
 0x188   :  { %v314_v20 = vld [vmem:[%s3609_s1 + $0x898] sm:$0xff]  ;;  %1211 = vmatpush.msrb.mxu3 %v514_v17  ;;  %v1247_v17 = vld [vmem:[%s3611_s3 + $0xc8] sm:$0xff] }
 0x189   :  { %v378_v22 = vld [vmem:[%s3609_s1 + $0xa98] sm:$0xff]  ;;  %1153 = vmatpush.msrb.mxu0 %v314_v20  ;;  %v1264_v20 = vld [vmem:[%s3611_s3 + $0x150] sm:$0xff] }
 0x18a   :  { %v442_v23 = vld [vmem:[%s3609_s1 + $0xc98] sm:$0xff]  ;;  %1173 = vmatpush.msrb.mxu1 %v378_v22  ;;  %v1230_v22 = vld [vmem:[%s3611_s3 + $0x40] sm:$0xff] }
 0x18b   :  { %v510_v25 = vld [vmem:[%s3609_s1 + $0xeb8] sm:$0xff]  ;;  %1193 = vmatpush.msrb.mxu2 %v442_v23  ;;  %v1246_v23 = vld [vmem:[%s3611_s3 + $0xc0] sm:$0xff] }
 0x18c   :  { %v310_v28 = vld [vmem:[%s3609_s1 + $0x878] sm:$0xff]  ;;  %1212 = vmatpush.msrb.mxu3 %v510_v25  ;;  %v1263_v25 = vld [vmem:[%s3611_s3 + $0x148] sm:$0xff] }
 0x18d   :  { %v374_v29 = vld [vmem:[%s3609_s1 + $0xa78] sm:$0xff]  ;;  %1154 = vmatpush.msrb.mxu0 %v310_v28  ;;  %v660_v28 = vadd.f32 %v3249_v35, %v640_v14  ;;  %v1227_v35 = vld [vmem:[%s3611_s3 + $0x28] sm:$0xff] }
 0x18e   :  { %v438_v1 = vld [vmem:[%s3609_s1 + $0xc78] sm:$0xff]  ;;  %1174 = vmatpush.msrb.mxu1 %v374_v29  ;;  %v820_v29 = vadd.f32 %v819_v18, %v800_v15 }
 0x18f   :  { %v506_v3 = vld [vmem:[%s3609_s1 + $0xe98] sm:$0xff]  ;;  %1194 = vmatpush.msrb.mxu2 %v438_v1 }
 0x190   :  { %v306_v30 = vld [vmem:[%s3609_s1 + $0x858] sm:$0xff]  ;;  %1213 = vmatpush.msrb.mxu3 %v506_v3  ;;  %v839_v3 = vpop.f32.mrf.mxu0 }
 0x191   :  { %v370_v33 = vld [vmem:[%s3609_s1 + $0xa58] sm:$0xff]  ;;  %1155 = vmatpush.msrb.mxu0 %v306_v30  ;;  %v1228_v30 = vld [vmem:[%s3611_s3 + $0x30] sm:$0xff] }
 0x192   :  { %v434_v34 = vld [vmem:[%s3609_s1 + $0xc58] sm:$0xff]  ;;  %1175 = vmatpush.msrb.mxu1 %v370_v33  ;;  %v1244_v33 = vld [vmem:[%s3611_s3 + $0xb0] sm:$0xff] }
 0x193   :  { %v502_v19 = vld [vmem:[%s3609_s1 + $0xe78] sm:$0xff]  ;;  %1195 = vmatpush.msrb.mxu2 %v434_v34  ;;  %v680_v34 = vadd.f32 %v3237_v31, %v660_v28  ;;  %v1226_v31 = vld [vmem:[%s3611_s3 + $0x20] sm:$0xff] }
 0x194   :  { %v1534_v36 = vld.sshfl [vmem:[#allocation1 + $0x18] sm:$0xff pattern:$0x73625140]  ;;  %1214 = vmatpush.msrb.mxu3 %v502_v19  ;;  %v840_v19 = vadd.f32 %v839_v3, %v820_v29  ;;  %v1278_v28 = vld [vmem:[%s3611_s3 + $0x1c0] sm:$0xff] }
 0x195   :  { %1138 = vmatmul.f32.vlgmr.msra.gmra.mxu3 %v1534_v36  ;;  %v302_v37 = vld [vmem:[%s3609_s1 + $0x838] sm:$0xff]  ;;  %v1243_v36 = vld [vmem:[%s3611_s3 + $0xa8] sm:$0xff]  ;;  %v1274_v3 = vld [vmem:[%s3611_s3 + $0x1a0] sm:$0xff] }
 0x196   :  { %v366_v38 = vld [vmem:[%s3609_s1 + $0xa38] sm:$0xff]  ;;  %1156 = vmatpush.msrb.mxu0 %v302_v37  ;;  %v1262_v37 = vld [vmem:[%s3611_s3 + $0x140] sm:$0xff] }
 0x197   :  { %v430_v24 = vld [vmem:[%s3609_s1 + $0xc38] sm:$0xff]  ;;  %1176 = vmatpush.msrb.mxu1 %v366_v38  ;;  %v859_v38 = vpop.f32.mrf.mxu1 }
 0x198   :  { %v498_v39 = vld [vmem:[%s3609_s1 + $0xe58] sm:$0xff]  ;;  %1196 = vmatpush.msrb.mxu2 %v430_v24  ;;  %v1242_v24 = vld [vmem:[%s3611_s3 + $0xa0] sm:$0xff] }
 0x199   :  { %v298_v41 = vld [vmem:[%s3609_s1 + $0x818] sm:$0xff]  ;;  %1215 = vmatpush.msrb.mxu3 %v498_v39 }
 0x19a   :  { %v362_v42 = vld [vmem:[%s3609_s1 + $0xa18] sm:$0xff]  ;;  %1157 = vmatpush.msrb.mxu0 %v298_v41  ;;  %v700_v41 = vadd.f32 %v3268_v21, %v680_v34  ;;  %v1224_v21 = vld [vmem:[%s3611_s3 + $0x10] sm:$0xff]  ;;  %v1271_v34 = vld [vmem:[%s3611_s3 + $0x188] sm:$0xff] }
 0x19b   :  { %v426_v26 = vld [vmem:[%s3609_s1 + $0xc18] sm:$0xff]  ;;  %1177 = vmatpush.msrb.mxu1 %v362_v42  ;;  %1158 = vmatmul.f32.vlgmr.msrb.gmra.mxu0 %v1536_v53  ;;  %v860_v42 = vadd.f32 %v859_v38, %v840_v19  ;;  %v1270_v19 = vld [vmem:[%s3611_s3 + $0x180] sm:$0xff] }
 0x19c   :  { %v494_v43 = vld [vmem:[%s3609_s1 + $0xe38] sm:$0xff]  ;;  %1197 = vmatpush.msrb.mxu2 %v426_v26  ;;  %1178 = vmatmul.f32.vlgmr.msrb.gmra.mxu1 %v1538_v61  ;;  %v720_v46 = vadd.f32 %v3294_v32, %v700_v41  ;;  %v1238_v32 = vld [vmem:[%s3611_s3 + $0x80] sm:$0xff]  ;;  %v1283_v61 = vld [vmem:[%s3611_s3 + $0x1e8] sm:$0xff] }
 0x19d   :  { %v1237_v9 = vld [vmem:[%s3611_s3 + $0x78] sm:$0xff]  ;;  %1216 = vmatpush.msrb.mxu3 %v494_v43  ;;  %1198 = vmatmul.f32.vlgmr.msrb.gmra.mxu2 %v1535_v48  ;;  %v1223_v48 = vld [vmem:[%s3611_s3 + $0x8] sm:$0xff] }
 0x19e   :  { %v1253_v44 = vld [vmem:[%s3611_s3 + $0xf8] sm:$0xff]  ;;  %1324 = vmatpush.msra.mxu0 %v1237_v9  ;;  %v879_v9 = vpop.f32.mrf.mxu2  ;;  %v740_v53 = vadd.f32 %v3312_v58, %v720_v46  ;;  %v1254_v58 = vld [vmem:[%s3611_s3 + $0x100] sm:$0xff] }
 0x19f   :  { %v490_v45 = vld [vmem:[%s3609_s1 + $0xe18] sm:$0xff]  ;;  %1344 = vmatpush.msra.mxu1 %v1253_v44  ;;  %v1240_v44 = vld [vmem:[%s3611_s3 + $0x90] sm:$0xff]  ;;  %v880_v47 = vadd.f32 %v879_v9, %v860_v42 }
 0x1a0   :  { %1217 = vmatpush.msrb.mxu3 %v490_v45  ;;  %v1269_v51 = vld [vmem:[%s3611_s3 + $0x178] sm:$0xff]  ;;  %1325 = vmatpush.msra.mxu0 %v1236_v49  ;;  %v1259_v45 = vld [vmem:[%s3611_s3 + $0x128] sm:$0xff] }
 0x1a1   :  { %v1537_v54 = vld.sshfl [vmem:[#allocation1 + $0x38] sm:$0xff pattern:$0x73625140]  ;;  %1345 = vmatpush.msra.mxu1 %v1252_v50  ;;  %1364 = vmatpush.msra.mxu2 %v1269_v51  ;;  %v1239_v49 = vld [vmem:[%s3611_s3 + $0x88] sm:$0xff]  ;;  %v899_v50 = vpop.f32.mrf.mxu3  ;;  %v1222_v51 = vld [vmem:[%s3611_s3] sm:$0xff] }
 0x1a2   :  { %1218 = vmatmul.f32.vlgmr.msrb.gmra.mxu3 %v1537_v54  ;;  %1326 = vmatpush.msra.mxu0 %v1235_v56  ;;  %v1233_v6 = vld [vmem:[%s3611_s3 + $0x58] sm:$0xff]  ;;  %v900_v54 = vadd.f32 %v899_v50, %v880_v47  ;;  %v1256_v56 = vld [vmem:[%s3611_s3 + $0x110] sm:$0xff] }
 0x1a3   :  { %1346 = vmatpush.msra.mxu1 %v1251_v57  ;;  %v1249_v7 = vld [vmem:[%s3611_s3 + $0xd8] sm:$0xff]  ;;  %1365 = vmatpush.msra.mxu2 %v1268_v60  ;;  %v1255_v57 = vld [vmem:[%s3611_s3 + $0x108] sm:$0xff]  ;;  %v1284_v60 = vld [vmem:[%s3611_s3 + $0x1f0] sm:$0xff] }
 0x1a4   :  { %1327 = vmatpush.msra.mxu0 %v1234_v62  ;;  %v1265_v13 = vld [vmem:[%s3611_s3 + $0x158] sm:$0xff]  ;;  %v1282_v62 = vld [vmem:[%s3611_s3 + $0x1e0] sm:$0xff]  ;;  %v1301_v47 = vld [vmem:[%s3613_s5 + $0x70] sm:$0xff] }
 0x1a5   :  { %1347 = vmatpush.msra.mxu1 %v1250_v63  ;;  %1366 = vmatpush.msra.mxu2 %v1267_v0  ;;  %v1229_v1 = vld [vmem:[%s3611_s3 + $0x38] sm:$0xff]  ;;  %v1280_v0 = vld [vmem:[%s3611_s3 + $0x1d0] sm:$0xff] }
 0x1a6   :  { %1328 = vmatpush.msra.mxu0 %v1233_v6  ;;  %v1245_v2 = vld [vmem:[%s3611_s3 + $0xb8] sm:$0xff] }
 0x1a7   :  { %1348 = vmatpush.msra.mxu1 %v1249_v7  ;;  %1367 = vmatpush.msra.mxu2 %v1266_v10  ;;  %v1261_v39 = vld [vmem:[%s3611_s3 + $0x138] sm:$0xff] }
 0x1a8   :  { %1329 = vmatpush.msra.mxu0 %v1232_v11  ;;  %v1225_v26 = vld [vmem:[%s3611_s3 + $0x18] sm:$0xff] }
 0x1a9   :  { %1349 = vmatpush.msra.mxu1 %v1248_v12  ;;  %1368 = vmatpush.msra.mxu2 %v1265_v13  ;;  %v1241_v43 = vld [vmem:[%s3611_s3 + $0x98] sm:$0xff] }
 0x1aa   :  { %1330 = vmatpush.msra.mxu0 %v1231_v16  ;;  %v1257_v55 = vld [vmem:[%s3611_s3 + $0x118] sm:$0xff] }
 0x1ab   :  { %1350 = vmatpush.msra.mxu1 %v1247_v17  ;;  %1369 = vmatpush.msra.mxu2 %v1264_v20  ;;  %v1285_v59 = vld [vmem:[%s3611_s3 + $0x1f8] sm:$0xff] }
 0x1ac   :  { %1331 = vmatpush.msra.mxu0 %v1230_v22  ;;  %1384 = vmatpush.msra.mxu3 %v1285_v59  ;;  %v1281_v63 = vld [vmem:[%s3611_s3 + $0x1d8] sm:$0xff]  ;;  %v1288_v59 = vld [vmem:[%s3613_s5 + $0x8] sm:$0xff] }
 0x1ad   :  { %1351 = vmatpush.msra.mxu1 %v1246_v23  ;;  %1370 = vmatpush.msra.mxu2 %v1263_v25  ;;  %v1277_v29 = vld [vmem:[%s3611_s3 + $0x1b8] sm:$0xff] }
 0x1ae   :  { %1332 = vmatpush.msra.mxu0 %v1229_v1  ;;  %1385 = vmatpush.msra.mxu3 %v1284_v60  ;;  %v1276_v1 = vld [vmem:[%s3611_s3 + $0x1b0] sm:$0xff]  ;;  %v1298_v50 = vld [vmem:[%s3613_s5 + $0x58] sm:$0xff]  ;;  %v1287_v60 = vld [vmem:[%s3613_s5] sm:$0xff] }
 0x1af   :  { %1352 = vmatpush.msra.mxu1 %v1245_v2  ;;  %1371 = vmatpush.msra.mxu2 %v1262_v37  ;;  %v1275_v2 = vld [vmem:[%s3611_s3 + $0x1a8] sm:$0xff] }
 0x1b0   :  { %1333 = vmatpush.msra.mxu0 %v1228_v30  ;;  %1386 = vmatpush.msra.mxu3 %v1283_v61  ;;  %v1273_v30 = vld [vmem:[%s3611_s3 + $0x198] sm:$0xff]  ;;  %v1524_v61 = vld [vmem:[%s3612_s4] ss:$0 sm:$0xff] }
 0x1b1   :  { %1353 = vmatpush.msra.mxu1 %v1244_v33  ;;  %1372 = vmatpush.msra.mxu2 %v1261_v39  ;;  %v919_v6 = vpop.f32.mrf.mxu0  ;;  %v1272_v33 = vld [vmem:[%s3611_s3 + $0x190] sm:$0xff] }
 0x1b2   :  { %1334 = vmatpush.msra.mxu0 %v1227_v35  ;;  %1387 = vmatpush.msra.mxu3 %v1282_v62  ;;  %v920_v7 = vadd.f32 %v919_v6, %v555_v4  ;;  %v556_v35 = vperm.slane %v3266_v40, 3  ;;  %v1302_v40 = vld [vmem:[%s3613_s5 + $0x78] sm:$0xff] }
 0x1b3   :  { %1354 = vmatpush.msra.mxu1 %v1243_v36  ;;  %1373 = vmatpush.msra.mxu2 %v1260_v27  ;;  %v939_v8 = vpop.f32.mrf.mxu1 }
 0x1b4   :  { %1335 = vmatpush.msra.mxu0 %v1226_v31  ;;  %1388 = vmatpush.msra.mxu3 %v1281_v63  ;;  %v940_v10 = vadd.f32 %v939_v8, %v920_v7 }
 0x1b5   :  { %1355 = vmatpush.msra.mxu1 %v1242_v24  ;;  %1374 = vmatpush.msra.mxu2 %v1259_v45 }
 0x1b6   :  { %1336 = vmatpush.msra.mxu0 %v1225_v26  ;;  %1389 = vmatpush.msra.mxu3 %v1280_v0  ;;  %v959_v11 = vpop.f32.mrf.mxu2 }
 0x1b7   :  { %1356 = vmatpush.msra.mxu1 %v1241_v43  ;;  %1375 = vmatpush.msra.mxu2 %v1258_v52  ;;  %v960_v12 = vadd.f32 %v959_v11, %v940_v10  ;;  %v979_v13 = vpop.f32.mrf.mxu3  ;;  %v1295_v52 = vld [vmem:[%s3613_s5 + $0x40] sm:$0xff]  ;;  %v1319_v11 = vld [vmem:[%s3615_s7 + $0x78] sm:$0xff] }
 0x1b8   :  { %1337 = vmatpush.msra.mxu0 %v1224_v21  ;;  %1390 = vmatpush.msra.mxu3 %v1279_v5 }
 0x1b9   :  { %1357 = vmatpush.msra.mxu1 %v1240_v44  ;;  %1376 = vmatpush.msra.mxu2 %v1257_v55  ;;  %v980_v14 = vadd.f32 %v979_v13, %v960_v12  ;;  %v1292_v55 = vld [vmem:[%s3613_s5 + $0x28] sm:$0xff]  ;;  %v1318_v12 = vld [vmem:[%s3615_s7 + $0x70] sm:$0xff] }
 0x1ba   :  { %1338 = vmatpush.msra.mxu0 %v1223_v48  ;;  %v999_v15 = vpop.f32.mrf.mxu0  ;;  %1391 = vmatpush.msra.mxu3 %v1278_v28  ;;  %v1300_v48 = vld [vmem:[%s3613_s5 + $0x68] sm:$0xff]  ;;  %v1307_v28 = vld [vmem:[%s3615_s7 + $0x18] sm:$0xff] }
 0x1bb   :  { %1358 = vmatpush.msra.mxu1 %v1239_v49  ;;  %1377 = vmatpush.msra.mxu2 %v1256_v56  ;;  %v1000_v16 = vadd.f32 %v999_v15, %v980_v14  ;;  %v1299_v49 = vld [vmem:[%s3613_s5 + $0x60] sm:$0xff]  ;;  %v1317_v13 = vld [vmem:[%s3615_s7 + $0x68] sm:$0xff]  ;;  %v1315_v15 = vld [vmem:[%s3615_s7 + $0x58] sm:$0xff] }
 0x1bc   :  { %1339 = vmatpush.msra.mxu0 %v1222_v51  ;;  %1392 = vmatpush.msra.mxu3 %v1277_v29  ;;  %v1297_v51 = vld [vmem:[%s3613_s5 + $0x50] sm:$0xff]  ;;  %v1291_v56 = vld [vmem:[%s3613_s5 + $0x20] sm:$0xff] }
 0x1bd   :  { %1359 = vmatpush.msra.mxu1 %v1238_v32  ;;  %1340 = vmatmul.f32.vlgmr.msra.gmra.mxu0 %v740_v53  ;;  %v1296_v32 = vld [vmem:[%s3613_s5 + $0x48] sm:$0xff]  ;;  %v1294_v53 = vld [vmem:[%s3613_s5 + $0x38] sm:$0xff]  ;;  %v1316_v14 = vld [vmem:[%s3615_s7 + $0x60] sm:$0xff] }
 0x1be   :  { %1360 = vmatmul.f32.vlgmr.msra.gmra.mxu1 %v900_v54  ;;  %1378 = vmatpush.msra.mxu2 %v1255_v57  ;;  %v1293_v54 = vld [vmem:[%s3613_s5 + $0x30] sm:$0xff]  ;;  %v1290_v57 = vld [vmem:[%s3613_s5 + $0x18] sm:$0xff] }
 0x1bf   :  { %1393 = vmatpush.msra.mxu3 %v1276_v1  ;;  %1408 = vmatpush.msrb.mxu0 %v1302_v40  ;;  %v1306_v29 = vld [vmem:[%s3615_s7 + $0x10] sm:$0xff]  ;;  %v1305_v1 = vld [vmem:[%s3615_s7 + $0x8] sm:$0xff] }
 0x1c0   :  { %1379 = vmatpush.msra.mxu2 %v1254_v58  ;;  %v1289_v58 = vld [vmem:[%s3613_s5 + $0x10] sm:$0xff]  ;;  %1450 = vmatpush.msrb.mxu1 %v1319_v11 }
 0x1c1   :  { %v1019_v17 = vpop.f32.mrf.mxu1  ;;  %1394 = vmatpush.msra.mxu3 %v1275_v2  ;;  %1409 = vmatpush.msrb.mxu0 %v1301_v47  ;;  %v1304_v2 = vld [vmem:[%s3615_s7] sm:$0xff] }
 0x1c2   :  { %v1020_v18 = vadd.f32 %v1019_v17, %v1000_v16  ;;  %v1039_v20 = vpop.f32.mrf.mxu2  ;;  %1451 = vmatpush.msrb.mxu1 %v1318_v12  ;;  %v1314_v16 = vld [vmem:[%s3615_s7 + $0x50] sm:$0xff]  ;;  %v1313_v17 = vld [vmem:[%s3615_s7 + $0x48] sm:$0xff] }
 0x1c3   :  { %1395 = vmatpush.msra.mxu3 %v1274_v3  ;;  %1410 = vmatpush.msrb.mxu0 %v1300_v48  ;;  %v1525_v3 = vld [vmem:[%s3614_s6] ss:$0 sm:$0xff]  ;;  %s1615_s6 = smov [#allocation4]  }
 0x1c4   :  { %v1040_v22 = vadd.f32 %v1039_v20, %v1020_v18  ;;  %1452 = vmatpush.msrb.mxu1 %v1317_v13  ;;  %v1312_v18 = vld [vmem:[%s3615_s7 + $0x40] sm:$0xff]  ;;  %v1311_v20 = vld [vmem:[%s3615_s7 + $0x38] sm:$0xff] }
 0x1c5   :  { %v1059_v23 = vpop.f32.mrf.mxu3  ;;  %1396 = vmatpush.msra.mxu3 %v1273_v30  ;;  %1411 = vmatpush.msrb.mxu0 %v1299_v49 }
 0x1c6   :  { %v1060_v25 = vadd.f32 %v1059_v23, %v1040_v22  ;;  %1453 = vmatpush.msrb.mxu1 %v1316_v14  ;;  %v1310_v22 = vld [vmem:[%s3615_s7 + $0x30] sm:$0xff]  ;;  %v1309_v23 = vld [vmem:[%s3615_s7 + $0x28] sm:$0xff] }
 0x1c7   :  { %1397 = vmatpush.msra.mxu3 %v1272_v33  ;;  %1412 = vmatpush.msrb.mxu0 %v1298_v50 }
 0x1c8   :  { %1380 = vmatmul.f32.vlgmr.msra.gmra.mxu2 %v1060_v25  ;;  %1454 = vmatpush.msrb.mxu1 %v1315_v15  ;;  %v1308_v25 = vld [vmem:[%s3615_s7 + $0x20] sm:$0xff]  ;;  %s1489_s7 = sshll.u32 %s1615_s6, 4  ;;  %s1490_s7 = int_to_ptr.vmem [resolvable:$true] %s1489_s7 }
 0x1c9   :  { %1398 = vmatpush.msra.mxu3 %v1271_v34  ;;  %1413 = vmatpush.msrb.mxu0 %v1297_v51 }
 0x1ca   :  { %1455 = vmatpush.msrb.mxu1 %v1314_v16 }
 0x1cb   :  { %1399 = vmatpush.msra.mxu3 %v1270_v19  ;;  %1414 = vmatpush.msrb.mxu0 %v1296_v32 }
 0x1cc   :  { %1456 = vmatpush.msrb.mxu1 %v1313_v17 }
 0x1cd   :  { %1415 = vmatpush.msrb.mxu0 %v1295_v52 }
 0x1ce   :  { %1457 = vmatpush.msrb.mxu1 %v1312_v18 }
 0x1cf   :  { %1416 = vmatpush.msrb.mxu0 %v1294_v53 }
 0x1d0   :  { %1458 = vmatpush.msrb.mxu1 %v1311_v20 }
 0x1d1   :  { %1417 = vmatpush.msrb.mxu0 %v1293_v54 }
 0x1d2   :  { %1459 = vmatpush.msrb.mxu1 %v1310_v22 }
 0x1d3   :  { %1418 = vmatpush.msrb.mxu0 %v1292_v55 }
 0x1d4   :  { %1460 = vmatpush.msrb.mxu1 %v1309_v23 }
 0x1d5   :  { %1419 = vmatpush.msrb.mxu0 %v1291_v56 }
 0x1d6   :  { %1461 = vmatpush.msrb.mxu1 %v1308_v25 }
 0x1d7   :  { %1420 = vmatpush.msrb.mxu0 %v1290_v57 }
 0x1d8   :  { %1462 = vmatpush.msrb.mxu1 %v1307_v28 }
 0x1d9   :  { %1421 = vmatpush.msrb.mxu0 %v1289_v58 }
 0x1da   :  { %1463 = vmatpush.msrb.mxu1 %v1306_v29 }
 0x1db   :  { %1422 = vmatpush.msrb.mxu0 %v1288_v59 }
 0x1dc   :  { %1464 = vmatpush.msrb.mxu1 %v1305_v1 }
 0x1dd   :  { %1423 = vmatpush.msrb.mxu0 %v1287_v60 }
 0x1de   :  { %1465 = vmatpush.msrb.mxu1 %v1304_v2 }
 0x1e2   :  { %v1099_v38 = vpop.f32.mrf.mxu1 }
 0x1e3   :  { %v1079_v36 = vpop.f32.mrf.mxu0 }
 0x1e4   :  { %v1080_v37 = vadd.f32 %v1079_v36, %v556_v35 }
 0x1e6   :  { %v1100_v31 = vadd.f32 %v1099_v38, %v1080_v37 }
 0x1e7   :  { %v1119_v24 = vpop.f32.mrf.mxu2 }
 0x1e8   :  { %v1120_v39 = vadd.f32 %v1119_v24, %v1100_v31 }
 0x218   :  { %v1139_v41 = vpop.f32.mrf.mxu3  ;;  %v1159_v26 = vpop.f32.mrf.mxu0 }
 0x219   :  { %v1140_v42 = vadd.f32 %v1139_v41, %v1120_v39  ;;  %v1179_v9 = vpop.f32.mrf.mxu1 }
 0x21b   :  { %v1160_v43 = vadd.f32 %v1159_v26, %v1140_v42 }
 0x21d   :  { %v1180_v27 = vadd.f32 %v1179_v9, %v1160_v43  ;;  %v1526_v9 = vld [vmem:[%s3616_s8] ss:$0 sm:$0xff] }
 0x220   :  { %v1199_v21 = vpop.f32.mrf.mxu2 }
 0x221   :  { %v1200_v44 = vadd.f32 %v1199_v21, %v1180_v27 }
 0x225   :  { %v1219_v45 = vpop.f32.mrf.mxu3 }
 0x226   :  { %v1220_v46 = vadd.f32 %v1219_v45, %v1200_v44 }
 0x228   :  { %1400 = vmatmul.f32.vlgmr.msra.gmra.mxu3 %v1220_v46 }
 0x23a   :  { %v1341_v62 = vpop.f32.mrf.mxu0 }
 0x23b   :  { %v1342_v63 = vadd.f32 %v1524_v61, %v1341_v62  ;;  %v1361_v0 = vpop.f32.mrf.mxu1 }
 0x23d   :  { %v1362_v5 = vadd.f32 %v1361_v0, %v1342_v63 }
 0x24b   :  { %v1381_v4 = vpop.f32.mrf.mxu2 }
 0x24c   :  { %v1382_v6 = vadd.f32 %v1381_v4, %v1362_v5 }
 0x2ab   :  { %v1401_v7 = vpop.f32.mrf.mxu3 }
 0x2ac   :  { %v1402_v8 = vadd.f32 %v1401_v7, %v1382_v6 }
 0x2ae   :  { %v1404_v10 = vmax.f32 %v1402_v8, 0.0 }
 0x2b0   :  { %1424 = vmatmul.f32.vlgmr.msrb.gmra.mxu0 %v1404_v10 }
 0x32d   :  { %v1425_v30 = vpop.f32.mrf.mxu0 }
 0x32e   :  { %v1426_v33 = vadd.f32 %v1525_v3, %v1425_v30 }
 0x330   :  { %v1520_v34 = vmul.f32 -1.442695, %v1426_v33  ;;  %1472 = vst [vmem:[#allocation6] sm:$0x3] %v1426_v33 }
 0x332   :  { %1527 = vpow2.f32 %v1520_v34 }
 0x338   :  { %v1528_v19 = vpop.eup %1527 }
 0x339   :  { %v1431_v35 = vadd.f32 1.0, %v1528_v19 }
 0x33b   :  { %1529 = vrcp.f32 %v1431_v35  ;;  %v1443_v31 = vand.u32 2147483648, %v1431_v35  ;;  %v1441_v39 = vand.u32 2147483647, %v1431_v35  ;;  %vm1437_vm1 = vweird.f32 %v1431_v35 }
 0x33d   :  { %v1444_v42 = vor.u32 1.1754944e-38, %v1443_v31  ;;  %vm1442_vm3 = vcmp.eq.f32.partialorder %v1441_v39, 8.507059e+37 }
 0x341   :  { %v1530_v36 = vpop.eup %1529 }
 0x342   :  { %v1433_v37 = vmul.f32 %v1530_v36, %v1431_v35  ;;  %vm1438_vm0 = vweird.f32 %v1530_v36 }
 0x343   :  { %vm1439_vm2 = vmor %vm1437_vm1, %vm1438_vm0 }
 0x344   :  { %v1434_v38 = vsub.f32 1.0, %v1433_v37 }
 0x346   :  { %v1435_v24 = vmul.f32 %v1530_v36, %v1434_v38 }
 0x348   :  { %v1436_v41 = vadd.f32 %v1530_v36, %v1435_v24 }
 0x34a   :  { %v1440_v26 = vsel %vm1439_vm2, %v1530_v36, %v1436_v41 }
 0x34b   :  { %v1445_v43 = vsel %vm1442_vm3, %v1444_v42, %v1440_v26 }
 0x34c   :  { %1466 = vmatmul.f32.vlgmr.msrb.gmra.mxu1 %v1445_v43  ;;  %1471 = vst [vmem:[#allocation4] sm:$0x3] %v1445_v43 }
 0x34d   :  { %1494 = dma.vmem_to_hbm [thread:$0]  %s1490_s7, 32, %s1492_s30, [#allocation5]  }
 0x34e   :  { %1505 = dma.vmem_to_hbm [thread:$0]  %s1501_s13, 32, %s1503_s14, [#allocation5]  }
 0x3c9   :  { %v1467_v27 = vpop.f32.mrf.mxu1 }
 0x3ca   :  { %v1468_v21 = vadd.f32 %v1526_v9, %v1467_v27 }
 0x3cc   :  { %1470 = vst [vmem:[#allocation2] sm:$0x3] %v1468_v21 }
 0x3cd   :  { %1483 = dma.vmem_to_hbm [thread:$0]  %s1479_s10, 32, %s1481_s20, [#allocation3]  }
 0x3ce   :  { %1611 = dma.done.wait [#allocation3], 32  }
 0x3cf   :  { %1612 = vsyncadd [#allocation3], 4294967264 }
 0x3d0   :  { %1613 = dma.done.wait [#allocation5], 64  }
 0x3d1   :  { %1614 = vsyncadd [#allocation5], 4294967232 }
 0x3d2   :  { %1518 = vsyncpa [#allocation3], 1 }
 0x3d3   :  { %1519 = vsyncpa [#allocation5], 1 }

</bundles_post_ra>
